<compile_context>
chip_gen: v5e
topology: v5e:2x2
jax: 0.10.0
libtpu: 0.0.40
codegen_flags: <defaults>
</compile_context>

<pallas_src>
import functools

import jax
import jax.numpy as jnp
from jax.experimental import pallas as pl
from jax.experimental.pallas import tpu as pltpu


# ---------------------------------------------------------------------------
# Fused wavefront kernel: all LSTM layers + final Linear in one invocation
# ---------------------------------------------------------------------------
def fused_wavefront_lstm_kernel(x_ref, wih0_ref, wrec_ref, brec_ref,
                                wlin_ref, blin_ref, out_ref,
                                proj_ref, hseq_ref,
                                *, num_layers, seq_len, batch, hidden):
    """Shapes (B = padded batch, multiple of 8):
      x_ref    : (S*B, D)        time-major, batch-padded layer-0 input
      wih0_ref : (D, 4H)         layer-0 input->gates weight (transposed)
      wrec_ref : (L*H, L*4H)     fused block recurrent/cross-layer weight
      brec_ref : (1, L*4H)       per-layer combined biases (b_ih + b_hh)
      wlin_ref : (H, O_pad)      final Linear weight (transposed, lane-padded)
      blin_ref : (1, O_pad)
      out_ref  : (S*B, O_pad)    time-major model output (lane-padded)
      proj_ref : (S*B, 4H) f32   VMEM scratch: hoisted layer-0 input projection
      hseq_ref : (S*B, H)  f32   VMEM scratch: last layer's hidden sequence
    """
    L, S, B, H = num_layers, seq_len, batch, hidden

    # --- Hoisted layer-0 input projection: ONE (S*B, D) x (D, 4H) matmul ---
    proj_ref[...] = jnp.dot(x_ref[...], wih0_ref[...],
                            preferred_element_type=jnp.float32)

    w_rec = wrec_ref[...]        # (L*H, L*4H), stays resident in vregs
    b_rec = brec_ref[...]        # (1, L*4H)

    h = [jnp.zeros((B, H), jnp.float32) for _ in range(L)]
    c = [jnp.zeros((B, H), jnp.float32) for _ in range(L)]

    # --- Wavefront recurrence: step k runs layer l at timestep t = k - l ---
    # (statically unrolled; S and L are small)
    for k in range(S + L - 1):
        rec_in = h[0] if L == 1 else jnp.concatenate(h, axis=-1)        # (B, L*H)
        # One fused MXU pass produces every active layer's recurrent +
        # cross-layer gate contribution (256 output lanes for L=2, H=32).
        rec_out = jnp.dot(rec_in, w_rec,
                          preferred_element_type=jnp.float32) + b_rec   # (B, L*4H)

        for l in range(L):
            t = k - l
            if t < 0 or t >= S:
                continue                                  # layer idle this step
            g = rec_out[:, l * 4 * H:(l + 1) * 4 * H]     # full-vreg 128-lane block
            if l == 0:
                g = g + proj_ref[t * B:(t + 1) * B, :]    # aligned full-tile load
            # Whole-vreg activations (2 EUP calls), then cheap lane slices.
            sig = jax.nn.sigmoid(g)
            tnh = jnp.tanh(g)
            i_g = sig[:, 0 * H:1 * H]
            f_g = sig[:, 1 * H:2 * H]
            g_g = tnh[:, 2 * H:3 * H]
            o_g = sig[:, 3 * H:4 * H]
            c_new = f_g * c[l] + i_g * g_g
            h_new = o_g * jnp.tanh(c_new)
            c[l] = c_new
            h[l] = h_new
            if l == L - 1:
                hseq_ref[t * B:(t + 1) * B, :] = h_new    # aligned full-tile store

    # --- Final Linear, fused (reads the last layer's sequence from VMEM) ---
    y = jnp.dot(hseq_ref[...], wlin_ref[...],
                preferred_element_type=jnp.float32) + blin_ref[...]     # (S*B, O_pad)
    out_ref[...] = y.astype(out_ref.dtype)


# ---------------------------------------------------------------------------
# Wrapper
# ---------------------------------------------------------------------------
def fused_lstm_forward(x, wih0_t, w_rec, b_rec, wlin_t, blin, out_dim):
    """x: (B, S, D) batch-first. Returns (B, S, out_dim) batch-first."""
    B, S, D = x.shape
    H = wih0_t.shape[1] // 4
    L = w_rec.shape[0] // H
    O_pad = wlin_t.shape[1]
    B_pad = ((B + 7) // 8) * 8                 # f32 sublane tile

    # time-major + batch pad: (B,S,D) -> (S,B_pad,D) -> (S*B_pad, D)
    x_tm = jnp.transpose(x, (1, 0, 2))
    if B_pad != B:
        x_tm = jnp.pad(x_tm, ((0, 0), (0, B_pad - B), (0, 0)))
    x_tm = x_tm.reshape(S * B_pad, D)

    kernel = functools.partial(fused_wavefront_lstm_kernel,
                               num_layers=L, seq_len=S, batch=B_pad, hidden=H)

    y2d = pl.pallas_call(
        kernel,
        out_shape=jax.ShapeDtypeStruct((S * B_pad, O_pad), jnp.float32),
        grid_spec=pltpu.PrefetchScalarGridSpec(
            num_scalar_prefetch=0,
            grid=(1,),                           # single invocation
            in_specs=[
                pl.BlockSpec((S * B_pad, D), lambda i: (0, 0)),
                pl.BlockSpec((D, 4 * H), lambda i: (0, 0)),
                pl.BlockSpec((L * H, L * 4 * H), lambda i: (0, 0)),
                pl.BlockSpec((1, L * 4 * H), lambda i: (0, 0)),
                pl.BlockSpec((H, O_pad), lambda i: (0, 0)),
                pl.BlockSpec((1, O_pad), lambda i: (0, 0)),
            ],
            out_specs=pl.BlockSpec((S * B_pad, O_pad), lambda i: (0, 0)),
            scratch_shapes=[
                pltpu.VMEM((S * B_pad, 4 * H), jnp.float32),   # layer-0 projection
                pltpu.VMEM((S * B_pad, H), jnp.float32),       # last-layer h sequence
            ],
        ),
        compiler_params=pltpu.CompilerParams(
            dimension_semantics=("arbitrary",)),
    )(x_tm, wih0_t, w_rec, b_rec, wlin_t, blin)

    # (S*B_pad, O_pad) -> drop batch/lane padding -> batch-first (B, S, O)
    y = y2d.reshape(S, B_pad, O_pad)[:, :B, :out_dim]
    return jnp.transpose(y, (1, 0, 2))


@functools.partial(jax.jit, static_argnames=("out_dim",))
def lstm_model_forward(x, kparams, *, out_dim):
    wih0_t, w_rec, b_rec, wlin_t, blin = kparams
    return fused_lstm_forward(x, wih0_t, w_rec, b_rec, wlin_t, blin, out_dim)


def prepare_params(params):
    """Pre-transpose / pre-combine weights ONCE (outside the jitted forward)."""
    lstm = params["lstm"]
    L = len(lstm)
    H = lstm[0][1].shape[1]

    wih0_t = jnp.transpose(lstm[0][0]).astype(jnp.float32)          # (D, 4H)

    # Fused block recurrent weight: diag = W_hh_l^T, superdiag = W_ih_l^T.
    w_rec = jnp.zeros((L * H, L * 4 * H), jnp.float32)
    b_rec = jnp.zeros((1, L * 4 * H), jnp.float32)
    for l, (w_ih, w_hh, b_ih, b_hh) in enumerate(lstm):
        w_rec = w_rec.at[l * H:(l + 1) * H,
                         l * 4 * H:(l + 1) * 4 * H].set(jnp.transpose(w_hh))
        if l >= 1:
            w_rec = w_rec.at[(l - 1) * H:l * H,
                             l * 4 * H:(l + 1) * 4 * H].set(jnp.transpose(w_ih))
        b_rec = b_rec.at[:, l * 4 * H:(l + 1) * 4 * H].set(
            (b_ih + b_hh).reshape(1, -1))

    w_lin, b_lin = params["linear"]
    O = w_lin.shape[0]
    O_pad = ((O + 127) // 128) * 128                                 # lane-dense store
    wlin_t = jnp.zeros((H, O_pad), jnp.float32).at[:, :O].set(jnp.transpose(w_lin))
    blin = jnp.zeros((1, O_pad), jnp.float32).at[:, :O].set(b_lin.reshape(1, -1))
    return (wih0_t, w_rec, b_rec, wlin_t, blin)


# ---------------------------------------------------------------------------
# Init + pure-JAX reference (torch.nn.LSTM semantics, gate order i,f,g,o)
# ---------------------------------------------------------------------------
def init_params(key, input_dim, hidden_dim, layer_dim, output_dim):
    params = {"lstm": [], "linear": None}
    k = 1.0 / jnp.sqrt(hidden_dim)
    for layer in range(layer_dim):
        in_d = input_dim if layer == 0 else hidden_dim
        key, k1, k2, k3, k4 = jax.random.split(key, 5)
        w_ih = jax.random.uniform(k1, (4 * hidden_dim, in_d), jnp.float32, -k, k)
        w_hh = jax.random.uniform(k2, (4 * hidden_dim, hidden_dim), jnp.float32, -k, k)
        b_ih = jax.random.uniform(k3, (4 * hidden_dim,), jnp.float32, -k, k)
        b_hh = jax.random.uniform(k4, (4 * hidden_dim,), jnp.float32, -k, k)
        params["lstm"].append((w_ih, w_hh, b_ih, b_hh))
    key, k1, k2 = jax.random.split(key, 3)
    w_lin = jax.random.uniform(k1, (output_dim, hidden_dim), jnp.float32, -k, k)
    b_lin = jax.random.uniform(k2, (output_dim,), jnp.float32, -k, k)
    params["linear"] = (w_lin, b_lin)
    return params


def ref_forward(x, params):
    h_seq = x
    for (w_ih, w_hh, b_ih, b_hh) in params["lstm"]:
        B, S, _ = h_seq.shape
        H = w_hh.shape[1]

        def step(carry, x_t):
            h, c = carry
            gates = x_t @ w_ih.T + h @ w_hh.T + b_ih + b_hh
            i = jax.nn.sigmoid(gates[:, 0 * H:1 * H])
            f = jax.nn.sigmoid(gates[:, 1 * H:2 * H])
            g = jnp.tanh(gates[:, 2 * H:3 * H])
            o = jax.nn.sigmoid(gates[:, 3 * H:4 * H])
            c = f * c + i * g
            h = o * jnp.tanh(c)
            return (h, c), h

        init = (jnp.zeros((B, H), jnp.float32), jnp.zeros((B, H), jnp.float32))
        _, ys = jax.lax.scan(step, init, jnp.transpose(h_seq, (1, 0, 2)))
        h_seq = jnp.transpose(ys, (1, 0, 2))
    w_lin, b_lin = params["linear"]
    return h_seq @ w_lin.T + b_lin


if __name__ == "__main__":
    batch, seq, input_dim, hidden_dim, layer_dim, output_dim = 4, 8, 16, 32, 2, 8

    key = jax.random.PRNGKey(0)
    pkey, xkey = jax.random.split(key)
    params = init_params(pkey, input_dim, hidden_dim, layer_dim, output_dim)
    x = jax.random.normal(xkey, (batch, seq, input_dim), jnp.float32)

    kparams = prepare_params(params)  # once, outside the jitted forward

    out = lstm_model_forward(x, kparams, out_dim=output_dim)
    out = jax.block_until_ready(out)

    ref = jax.block_until_ready(ref_forward(x, params))
    assert out.shape == (batch, seq, output_dim), out.shape
    err = float(jnp.max(jnp.abs(out - ref)))
    assert jnp.allclose(out, ref, atol=1e-4, rtol=1e-4), err

    print("KERNEL_OK")
</pallas_src>

<mosaic_0001>
module attributes {stable_mosaic.version = 11 : i64} {
  func.func @fused_wavefront_lstm_kernel(%arg0: i32, %arg1: memref<64x16xf32, #tpu.memory_space<vmem>>, %arg2: memref<16x128xf32, #tpu.memory_space<vmem>>, %arg3: memref<64x256xf32, #tpu.memory_space<vmem>>, %arg4: memref<1x256xf32, #tpu.memory_space<vmem>>, %arg5: memref<32x128xf32, #tpu.memory_space<vmem>>, %arg6: memref<1x128xf32, #tpu.memory_space<vmem>>, %arg7: memref<64x128xf32, #tpu.memory_space<vmem>>, %arg8: memref<64x128xf32, #tpu.memory_space<vmem>>, %arg9: memref<64x32xf32, #tpu.memory_space<vmem>>) attributes {dimension_semantics = [#tpu.dimension_semantics<arbitrary>], iteration_bounds = array<i64: 1>, scalar_prefetch = 0 : i64, scratch_operands = 2 : i64, tpu.core_type = #tpu.core_type<tc>, window_params = [{pipeline_mode = #tpu.pipeline_mode<synchronous>, transform_indices = @transform_0, window_bounds = array<i64: 64, 16>}, {pipeline_mode = #tpu.pipeline_mode<synchronous>, transform_indices = @transform_1, window_bounds = array<i64: 16, 128>}, {pipeline_mode = #tpu.pipeline_mode<synchronous>, transform_indices = @transform_2, window_bounds = array<i64: 64, 256>}, {pipeline_mode = #tpu.pipeline_mode<synchronous>, transform_indices = @transform_3, window_bounds = array<i64: 1, 256>}, {pipeline_mode = #tpu.pipeline_mode<synchronous>, transform_indices = @transform_4, window_bounds = array<i64: 32, 128>}, {pipeline_mode = #tpu.pipeline_mode<synchronous>, transform_indices = @transform_5, window_bounds = array<i64: 1, 128>}, {pipeline_mode = #tpu.pipeline_mode<synchronous>, transform_indices = @transform_6, window_bounds = array<i64: 64, 128>}]} {
    %c0 = arith.constant 0 : index
    %c0_0 = arith.constant 0 : index
    %0 = vector.load %arg1[%c0, %c0_0] : memref<64x16xf32, #tpu.memory_space<vmem>>, vector<64x16xf32>
    %c0_1 = arith.constant 0 : index
    %c0_2 = arith.constant 0 : index
    %1 = vector.load %arg2[%c0_1, %c0_2] : memref<16x128xf32, #tpu.memory_space<vmem>>, vector<16x128xf32>
    %cst = arith.constant dense<0.000000e+00> : vector<64x128xf32>
    %2 = tpu.matmul %0, %1, %cst {dimension_numbers = #tpu.dot_dimension_numbers<[1], [0], [0], [1], [0, 0, 1, 1], [], []>} : vector<64x16xf32>, vector<16x128xf32>, vector<64x128xf32> -> vector<64x128xf32>
    %c0_3 = arith.constant 0 : index
    %c0_4 = arith.constant 0 : index
    %3 = vector.load %arg8[%c0_3, %c0_4] : memref<64x128xf32, #tpu.memory_space<vmem>>, vector<64x128xf32>
    tpu.vector_store %arg8[%c0_3, %c0_4], %2 {strides = array<i32>} : memref<64x128xf32, #tpu.memory_space<vmem>>, vector<64x128xf32>,
    %c0_5 = arith.constant 0 : index
    %c0_6 = arith.constant 0 : index
    %4 = vector.load %arg3[%c0_5, %c0_6] : memref<64x256xf32, #tpu.memory_space<vmem>>, vector<64x256xf32>
    %c0_7 = arith.constant 0 : index
    %c0_8 = arith.constant 0 : index
    %5 = vector.load %arg4[%c0_7, %c0_8] : memref<1x256xf32, #tpu.memory_space<vmem>>, vector<1x256xf32>
    %cst_9 = arith.constant 0.000000e+00 : f32
    %6 = vector.broadcast %cst_9 : f32 to vector<8x32xf32>
    %cst_10 = arith.constant 0.000000e+00 : f32
    %7 = vector.broadcast %cst_10 : f32 to vector<8x32xf32>
    %cst_11 = arith.constant 0.000000e+00 : f32
    %8 = vector.broadcast %cst_11 : f32 to vector<8x32xf32>
    %cst_12 = arith.constant 0.000000e+00 : f32
    %9 = vector.broadcast %cst_12 : f32 to vector<8x32xf32>
    %10 = tpu.concatenate %6, %7 in 1 : vector<8x32xf32>, vector<8x32xf32> -> vector<8x64xf32>
    %cst_13 = arith.constant dense<0.000000e+00> : vector<8x256xf32>
    %11 = tpu.matmul %10, %4, %cst_13 {dimension_numbers = #tpu.dot_dimension_numbers<[1], [0], [0], [1], [0, 0, 1, 1], [], []>} : vector<8x64xf32>, vector<64x256xf32>, vector<8x256xf32> -> vector<8x256xf32>
    %12 = vector.broadcast %5 : vector<1x256xf32> to vector<8x256xf32>
    %13 = arith.addf %11, %12 : vector<8x256xf32>
    %14 = vector.extract_strided_slice %13 {offsets = [0, 0], sizes = [8, 128], strides = [1, 1]} : vector<8x256xf32> to vector<8x128xf32>
    %c0_14 = arith.constant 0 : index
    %c0_15 = arith.constant 0 : index
    %15 = vector.load %arg8[%c0_14, %c0_15] : memref<64x128xf32, #tpu.memory_space<vmem>>, vector<8x128xf32>
    %16 = arith.addf %14, %15 : vector<8x128xf32>
    %17 = arith.negf %16 : vector<8x128xf32>
    %18 = math.exp %17 : vector<8x128xf32>
    %cst_16 = arith.constant 1.000000e+00 : f32
    %19 = vector.broadcast %cst_16 : f32 to vector<8x128xf32>
    %20 = arith.addf %19, %18 : vector<8x128xf32>
    %21 = arith.divf %19, %20 : vector<8x128xf32>
    %22 = math.tanh %16 : vector<8x128xf32>
    %23 = vector.extract_strided_slice %21 {offsets = [0, 0], sizes = [8, 32], strides = [1, 1]} : vector<8x128xf32> to vector<8x32xf32>
    %24 = vector.extract_strided_slice %21 {offsets = [0, 32], sizes = [8, 32], strides = [1, 1]} : vector<8x128xf32> to vector<8x32xf32>
    %25 = vector.extract_strided_slice %22 {offsets = [0, 64], sizes = [8, 32], strides = [1, 1]} : vector<8x128xf32> to vector<8x32xf32>
    %26 = vector.extract_strided_slice %21 {offsets = [0, 96], sizes = [8, 32], strides = [1, 1]} : vector<8x128xf32> to vector<8x32xf32>
    %27 = arith.mulf %24, %8 : vector<8x32xf32>
    %28 = arith.mulf %23, %25 : vector<8x32xf32>
    %29 = arith.addf %27, %28 : vector<8x32xf32>
    %30 = math.tanh %29 : vector<8x32xf32>
    %31 = arith.mulf %26, %30 : vector<8x32xf32>
    %32 = tpu.concatenate %31, %7 in 1 : vector<8x32xf32>, vector<8x32xf32> -> vector<8x64xf32>
    %cst_17 = arith.constant dense<0.000000e+00> : vector<8x256xf32>
    %33 = tpu.matmul %32, %4, %cst_17 {dimension_numbers = #tpu.dot_dimension_numbers<[1], [0], [0], [1], [0, 0, 1, 1], [], []>} : vector<8x64xf32>, vector<64x256xf32>, vector<8x256xf32> -> vector<8x256xf32>
    %34 = vector.broadcast %5 : vector<1x256xf32> to vector<8x256xf32>
    %35 = arith.addf %33, %34 : vector<8x256xf32>
    %36 = vector.extract_strided_slice %35 {offsets = [0, 0], sizes = [8, 128], strides = [1, 1]} : vector<8x256xf32> to vector<8x128xf32>
    %c8 = arith.constant 8 : index
    %c0_18 = arith.constant 0 : index
    %37 = vector.load %arg8[%c8, %c0_18] : memref<64x128xf32, #tpu.memory_space<vmem>>, vector<8x128xf32>
    %38 = arith.addf %36, %37 : vector<8x128xf32>
    %39 = arith.negf %38 : vector<8x128xf32>
    %40 = math.exp %39 : vector<8x128xf32>
    %cst_19 = arith.constant 1.000000e+00 : f32
    %41 = vector.broadcast %cst_19 : f32 to vector<8x128xf32>
    %42 = arith.addf %41, %40 : vector<8x128xf32>
    %43 = arith.divf %41, %42 : vector<8x128xf32>
    %44 = math.tanh %38 : vector<8x128xf32>
    %45 = vector.extract_strided_slice %43 {offsets = [0, 0], sizes = [8, 32], strides = [1, 1]} : vector<8x128xf32> to vector<8x32xf32>
    %46 = vector.extract_strided_slice %43 {offsets = [0, 32], sizes = [8, 32], strides = [1, 1]} : vector<8x128xf32> to vector<8x32xf32>
    %47 = vector.extract_strided_slice %44 {offsets = [0, 64], sizes = [8, 32], strides = [1, 1]} : vector<8x128xf32> to vector<8x32xf32>
    %48 = vector.extract_strided_slice %43 {offsets = [0, 96], sizes = [8, 32], strides = [1, 1]} : vector<8x128xf32> to vector<8x32xf32>
    %49 = arith.mulf %46, %29 : vector<8x32xf32>
    %50 = arith.mulf %45, %47 : vector<8x32xf32>
    %51 = arith.addf %49, %50 : vector<8x32xf32>
    %52 = math.tanh %51 : vector<8x32xf32>
    %53 = arith.mulf %48, %52 : vector<8x32xf32>
    %54 = vector.extract_strided_slice %35 {offsets = [0, 128], sizes = [8, 128], strides = [1, 1]} : vector<8x256xf32> to vector<8x128xf32>
    %55 = arith.negf %54 : vector<8x128xf32>
    %56 = math.exp %55 : vector<8x128xf32>
    %cst_20 = arith.constant 1.000000e+00 : f32
    %57 = vector.broadcast %cst_20 : f32 to vector<8x128xf32>
    %58 = arith.addf %57, %56 : vector<8x128xf32>
    %59 = arith.divf %57, %58 : vector<8x128xf32>
    %60 = math.tanh %54 : vector<8x128xf32>
    %61 = vector.extract_strided_slice %59 {offsets = [0, 0], sizes = [8, 32], strides = [1, 1]} : vector<8x128xf32> to vector<8x32xf32>
    %62 = vector.extract_strided_slice %59 {offsets = [0, 32], sizes = [8, 32], strides = [1, 1]} : vector<8x128xf32> to vector<8x32xf32>
    %63 = vector.extract_strided_slice %60 {offsets = [0, 64], sizes = [8, 32], strides = [1, 1]} : vector<8x128xf32> to vector<8x32xf32>
    %64 = vector.extract_strided_slice %59 {offsets = [0, 96], sizes = [8, 32], strides = [1, 1]} : vector<8x128xf32> to vector<8x32xf32>
    %65 = arith.mulf %62, %9 : vector<8x32xf32>
    %66 = arith.mulf %61, %63 : vector<8x32xf32>
    %67 = arith.addf %65, %66 : vector<8x32xf32>
    %68 = math.tanh %67 : vector<8x32xf32>
    %69 = arith.mulf %64, %68 : vector<8x32xf32>
    %c0_21 = arith.constant 0 : index
    %c0_22 = arith.constant 0 : index
    %70 = vector.load %arg9[%c0_21, %c0_22] : memref<64x32xf32, #tpu.memory_space<vmem>>, vector<8x32xf32>
    tpu.vector_store %arg9[%c0_21, %c0_22], %69 {strides = array<i32>} : memref<64x32xf32, #tpu.memory_space<vmem>>, vector<8x32xf32>,
    %71 = tpu.concatenate %53, %69 in 1 : vector<8x32xf32>, vector<8x32xf32> -> vector<8x64xf32>
    %cst_23 = arith.constant dense<0.000000e+00> : vector<8x256xf32>
    %72 = tpu.matmul %71, %4, %cst_23 {dimension_numbers = #tpu.dot_dimension_numbers<[1], [0], [0], [1], [0, 0, 1, 1], [], []>} : vector<8x64xf32>, vector<64x256xf32>, vector<8x256xf32> -> vector<8x256xf32>
    %73 = vector.broadcast %5 : vector<1x256xf32> to vector<8x256xf32>
    %74 = arith.addf %72, %73 : vector<8x256xf32>
    %75 = vector.extract_strided_slice %74 {offsets = [0, 0], sizes = [8, 128], strides = [1, 1]} : vector<8x256xf32> to vector<8x128xf32>
    %c16 = arith.constant 16 : index
    %c0_24 = arith.constant 0 : index
    %76 = vector.load %arg8[%c16, %c0_24] : memref<64x128xf32, #tpu.memory_space<vmem>>, vector<8x128xf32>
    %77 = arith.addf %75, %76 : vector<8x128xf32>
    %78 = arith.negf %77 : vector<8x128xf32>
    %79 = math.exp %78 : vector<8x128xf32>
    %cst_25 = arith.constant 1.000000e+00 : f32
    %80 = vector.broadcast %cst_25 : f32 to vector<8x128xf32>
    %81 = arith.addf %80, %79 : vector<8x128xf32>
    %82 = arith.divf %80, %81 : vector<8x128xf32>
    %83 = math.tanh %77 : vector<8x128xf32>
    %84 = vector.extract_strided_slice %82 {offsets = [0, 0], sizes = [8, 32], strides = [1, 1]} : vector<8x128xf32> to vector<8x32xf32>
    %85 = vector.extract_strided_slice %82 {offsets = [0, 32], sizes = [8, 32], strides = [1, 1]} : vector<8x128xf32> to vector<8x32xf32>
    %86 = vector.extract_strided_slice %83 {offsets = [0, 64], sizes = [8, 32], strides = [1, 1]} : vector<8x128xf32> to vector<8x32xf32>
    %87 = vector.extract_strided_slice %82 {offsets = [0, 96], sizes = [8, 32], strides = [1, 1]} : vector<8x128xf32> to vector<8x32xf32>
    %88 = arith.mulf %85, %51 : vector<8x32xf32>
    %89 = arith.mulf %84, %86 : vector<8x32xf32>
    %90 = arith.addf %88, %89 : vector<8x32xf32>
    %91 = math.tanh %90 : vector<8x32xf32>
    %92 = arith.mulf %87, %91 : vector<8x32xf32>
    %93 = vector.extract_strided_slice %74 {offsets = [0, 128], sizes = [8, 128], strides = [1, 1]} : vector<8x256xf32> to vector<8x128xf32>
    %94 = arith.negf %93 : vector<8x128xf32>
    %95 = math.exp %94 : vector<8x128xf32>
    %cst_26 = arith.constant 1.000000e+00 : f32
    %96 = vector.broadcast %cst_26 : f32 to vector<8x128xf32>
    %97 = arith.addf %96, %95 : vector<8x128xf32>
    %98 = arith.divf %96, %97 : vector<8x128xf32>
    %99 = math.tanh %93 : vector<8x128xf32>
    %100 = vector.extract_strided_slice %98 {offsets = [0, 0], sizes = [8, 32], strides = [1, 1]} : vector<8x128xf32> to vector<8x32xf32>
    %101 = vector.extract_strided_slice %98 {offsets = [0, 32], sizes = [8, 32], strides = [1, 1]} : vector<8x128xf32> to vector<8x32xf32>
    %102 = vector.extract_strided_slice %99 {offsets = [0, 64], sizes = [8, 32], strides = [1, 1]} : vector<8x128xf32> to vector<8x32xf32>
    %103 = vector.extract_strided_slice %98 {offsets = [0, 96], sizes = [8, 32], strides = [1, 1]} : vector<8x128xf32> to vector<8x32xf32>
    %104 = arith.mulf %101, %67 : vector<8x32xf32>
    %105 = arith.mulf %100, %102 : vector<8x32xf32>
    %106 = arith.addf %104, %105 : vector<8x32xf32>
    %107 = math.tanh %106 : vector<8x32xf32>
    %108 = arith.mulf %103, %107 : vector<8x32xf32>
    %c8_27 = arith.constant 8 : index
    %c0_28 = arith.constant 0 : index
    %109 = vector.load %arg9[%c8_27, %c0_28] : memref<64x32xf32, #tpu.memory_space<vmem>>, vector<8x32xf32>
    tpu.vector_store %arg9[%c8_27, %c0_28], %108 {strides = array<i32>} : memref<64x32xf32, #tpu.memory_space<vmem>>, vector<8x32xf32>,
    %110 = tpu.concatenate %92, %108 in 1 : vector<8x32xf32>, vector<8x32xf32> -> vector<8x64xf32>
    %cst_29 = arith.constant dense<0.000000e+00> : vector<8x256xf32>
    %111 = tpu.matmul %110, %4, %cst_29 {dimension_numbers = #tpu.dot_dimension_numbers<[1], [0], [0], [1], [0, 0, 1, 1], [], []>} : vector<8x64xf32>, vector<64x256xf32>, vector<8x256xf32> -> vector<8x256xf32>
    %112 = vector.broadcast %5 : vector<1x256xf32> to vector<8x256xf32>
    %113 = arith.addf %111, %112 : vector<8x256xf32>
    %114 = vector.extract_strided_slice %113 {offsets = [0, 0], sizes = [8, 128], strides = [1, 1]} : vector<8x256xf32> to vector<8x128xf32>
    %c24 = arith.constant 24 : index
    %c0_30 = arith.constant 0 : index
    %115 = vector.load %arg8[%c24, %c0_30] : memref<64x128xf32, #tpu.memory_space<vmem>>, vector<8x128xf32>
    %116 = arith.addf %114, %115 : vector<8x128xf32>
    %117 = arith.negf %116 : vector<8x128xf32>
    %118 = math.exp %117 : vector<8x128xf32>
    %cst_31 = arith.constant 1.000000e+00 : f32
    %119 = vector.broadcast %cst_31 : f32 to vector<8x128xf32>
    %120 = arith.addf %119, %118 : vector<8x128xf32>
    %121 = arith.divf %119, %120 : vector<8x128xf32>
    %122 = math.tanh %116 : vector<8x128xf32>
    %123 = vector.extract_strided_slice %121 {offsets = [0, 0], sizes = [8, 32], strides = [1, 1]} : vector<8x128xf32> to vector<8x32xf32>
    %124 = vector.extract_strided_slice %121 {offsets = [0, 32], sizes = [8, 32], strides = [1, 1]} : vector<8x128xf32> to vector<8x32xf32>
    %125 = vector.extract_strided_slice %122 {offsets = [0, 64], sizes = [8, 32], strides = [1, 1]} : vector<8x128xf32> to vector<8x32xf32>
    %126 = vector.extract_strided_slice %121 {offsets = [0, 96], sizes = [8, 32], strides = [1, 1]} : vector<8x128xf32> to vector<8x32xf32>
    %127 = arith.mulf %124, %90 : vector<8x32xf32>
    %128 = arith.mulf %123, %125 : vector<8x32xf32>
    %129 = arith.addf %127, %128 : vector<8x32xf32>
    %130 = math.tanh %129 : vector<8x32xf32>
    %131 = arith.mulf %126, %130 : vector<8x32xf32>
    %132 = vector.extract_strided_slice %113 {offsets = [0, 128], sizes = [8, 128], strides = [1, 1]} : vector<8x256xf32> to vector<8x128xf32>
    %133 = arith.negf %132 : vector<8x128xf32>
    %134 = math.exp %133 : vector<8x128xf32>
    %cst_32 = arith.constant 1.000000e+00 : f32
    %135 = vector.broadcast %cst_32 : f32 to vector<8x128xf32>
    %136 = arith.addf %135, %134 : vector<8x128xf32>
    %137 = arith.divf %135, %136 : vector<8x128xf32>
    %138 = math.tanh %132 : vector<8x128xf32>
    %139 = vector.extract_strided_slice %137 {offsets = [0, 0], sizes = [8, 32], strides = [1, 1]} : vector<8x128xf32> to vector<8x32xf32>
    %140 = vector.extract_strided_slice %137 {offsets = [0, 32], sizes = [8, 32], strides = [1, 1]} : vector<8x128xf32> to vector<8x32xf32>
    %141 = vector.extract_strided_slice %138 {offsets = [0, 64], sizes = [8, 32], strides = [1, 1]} : vector<8x128xf32> to vector<8x32xf32>
    %142 = vector.extract_strided_slice %137 {offsets = [0, 96], sizes = [8, 32], strides = [1, 1]} : vector<8x128xf32> to vector<8x32xf32>
    %143 = arith.mulf %140, %106 : vector<8x32xf32>
    %144 = arith.mulf %139, %141 : vector<8x32xf32>
    %145 = arith.addf %143, %144 : vector<8x32xf32>
    %146 = math.tanh %145 : vector<8x32xf32>
    %147 = arith.mulf %142, %146 : vector<8x32xf32>
    %c16_33 = arith.constant 16 : index
    %c0_34 = arith.constant 0 : index
    %148 = vector.load %arg9[%c16_33, %c0_34] : memref<64x32xf32, #tpu.memory_space<vmem>>, vector<8x32xf32>
    tpu.vector_store %arg9[%c16_33, %c0_34], %147 {strides = array<i32>} : memref<64x32xf32, #tpu.memory_space<vmem>>, vector<8x32xf32>,
    %149 = tpu.concatenate %131, %147 in 1 : vector<8x32xf32>, vector<8x32xf32> -> vector<8x64xf32>
    %cst_35 = arith.constant dense<0.000000e+00> : vector<8x256xf32>
    %150 = tpu.matmul %149, %4, %cst_35 {dimension_numbers = #tpu.dot_dimension_numbers<[1], [0], [0], [1], [0, 0, 1, 1], [], []>} : vector<8x64xf32>, vector<64x256xf32>, vector<8x256xf32> -> vector<8x256xf32>
    %151 = vector.broadcast %5 : vector<1x256xf32> to vector<8x256xf32>
    %152 = arith.addf %150, %151 : vector<8x256xf32>
    %153 = vector.extract_strided_slice %152 {offsets = [0, 0], sizes = [8, 128], strides = [1, 1]} : vector<8x256xf32> to vector<8x128xf32>
    %c32 = arith.constant 32 : index
    %c0_36 = arith.constant 0 : index
    %154 = vector.load %arg8[%c32, %c0_36] : memref<64x128xf32, #tpu.memory_space<vmem>>, vector<8x128xf32>
    %155 = arith.addf %153, %154 : vector<8x128xf32>
    %156 = arith.negf %155 : vector<8x128xf32>
    %157 = math.exp %156 : vector<8x128xf32>
    %cst_37 = arith.constant 1.000000e+00 : f32
    %158 = vector.broadcast %cst_37 : f32 to vector<8x128xf32>
    %159 = arith.addf %158, %157 : vector<8x128xf32>
    %160 = arith.divf %158, %159 : vector<8x128xf32>
    %161 = math.tanh %155 : vector<8x128xf32>
    %162 = vector.extract_strided_slice %160 {offsets = [0, 0], sizes = [8, 32], strides = [1, 1]} : vector<8x128xf32> to vector<8x32xf32>
    %163 = vector.extract_strided_slice %160 {offsets = [0, 32], sizes = [8, 32], strides = [1, 1]} : vector<8x128xf32> to vector<8x32xf32>
    %164 = vector.extract_strided_slice %161 {offsets = [0, 64], sizes = [8, 32], strides = [1, 1]} : vector<8x128xf32> to vector<8x32xf32>
    %165 = vector.extract_strided_slice %160 {offsets = [0, 96], sizes = [8, 32], strides = [1, 1]} : vector<8x128xf32> to vector<8x32xf32>
    %166 = arith.mulf %163, %129 : vector<8x32xf32>
    %167 = arith.mulf %162, %164 : vector<8x32xf32>
    %168 = arith.addf %166, %167 : vector<8x32xf32>
    %169 = math.tanh %168 : vector<8x32xf32>
    %170 = arith.mulf %165, %169 : vector<8x32xf32>
    %171 = vector.extract_strided_slice %152 {offsets = [0, 128], sizes = [8, 128], strides = [1, 1]} : vector<8x256xf32> to vector<8x128xf32>
    %172 = arith.negf %171 : vector<8x128xf32>
    %173 = math.exp %172 : vector<8x128xf32>
    %cst_38 = arith.constant 1.000000e+00 : f32
    %174 = vector.broadcast %cst_38 : f32 to vector<8x128xf32>
    %175 = arith.addf %174, %173 : vector<8x128xf32>
    %176 = arith.divf %174, %175 : vector<8x128xf32>
    %177 = math.tanh %171 : vector<8x128xf32>
    %178 = vector.extract_strided_slice %176 {offsets = [0, 0], sizes = [8, 32], strides = [1, 1]} : vector<8x128xf32> to vector<8x32xf32>
    %179 = vector.extract_strided_slice %176 {offsets = [0, 32], sizes = [8, 32], strides = [1, 1]} : vector<8x128xf32> to vector<8x32xf32>
    %180 = vector.extract_strided_slice %177 {offsets = [0, 64], sizes = [8, 32], strides = [1, 1]} : vector<8x128xf32> to vector<8x32xf32>
    %181 = vector.extract_strided_slice %176 {offsets = [0, 96], sizes = [8, 32], strides = [1, 1]} : vector<8x128xf32> to vector<8x32xf32>
    %182 = arith.mulf %179, %145 : vector<8x32xf32>
    %183 = arith.mulf %178, %180 : vector<8x32xf32>
    %184 = arith.addf %182, %183 : vector<8x32xf32>
    %185 = math.tanh %184 : vector<8x32xf32>
    %186 = arith.mulf %181, %185 : vector<8x32xf32>
    %c24_39 = arith.constant 24 : index
    %c0_40 = arith.constant 0 : index
    %187 = vector.load %arg9[%c24_39, %c0_40] : memref<64x32xf32, #tpu.memory_space<vmem>>, vector<8x32xf32>
    tpu.vector_store %arg9[%c24_39, %c0_40], %186 {strides = array<i32>} : memref<64x32xf32, #tpu.memory_space<vmem>>, vector<8x32xf32>,
    %188 = tpu.concatenate %170, %186 in 1 : vector<8x32xf32>, vector<8x32xf32> -> vector<8x64xf32>
    %cst_41 = arith.constant dense<0.000000e+00> : vector<8x256xf32>
    %189 = tpu.matmul %188, %4, %cst_41 {dimension_numbers = #tpu.dot_dimension_numbers<[1], [0], [0], [1], [0, 0, 1, 1], [], []>} : vector<8x64xf32>, vector<64x256xf32>, vector<8x256xf32> -> vector<8x256xf32>
    %190 = vector.broadcast %5 : vector<1x256xf32> to vector<8x256xf32>
    %191 = arith.addf %189, %190 : vector<8x256xf32>
    %192 = vector.extract_strided_slice %191 {offsets = [0, 0], sizes = [8, 128], strides = [1, 1]} : vector<8x256xf32> to vector<8x128xf32>
    %c40 = arith.constant 40 : index
    %c0_42 = arith.constant 0 : index
    %193 = vector.load %arg8[%c40, %c0_42] : memref<64x128xf32, #tpu.memory_space<vmem>>, vector<8x128xf32>
    %194 = arith.addf %192, %193 : vector<8x128xf32>
    %195 = arith.negf %194 : vector<8x128xf32>
    %196 = math.exp %195 : vector<8x128xf32>
    %cst_43 = arith.constant 1.000000e+00 : f32
    %197 = vector.broadcast %cst_43 : f32 to vector<8x128xf32>
    %198 = arith.addf %197, %196 : vector<8x128xf32>
    %199 = arith.divf %197, %198 : vector<8x128xf32>
    %200 = math.tanh %194 : vector<8x128xf32>
    %201 = vector.extract_strided_slice %199 {offsets = [0, 0], sizes = [8, 32], strides = [1, 1]} : vector<8x128xf32> to vector<8x32xf32>
    %202 = vector.extract_strided_slice %199 {offsets = [0, 32], sizes = [8, 32], strides = [1, 1]} : vector<8x128xf32> to vector<8x32xf32>
    %203 = vector.extract_strided_slice %200 {offsets = [0, 64], sizes = [8, 32], strides = [1, 1]} : vector<8x128xf32> to vector<8x32xf32>
    %204 = vector.extract_strided_slice %199 {offsets = [0, 96], sizes = [8, 32], strides = [1, 1]} : vector<8x128xf32> to vector<8x32xf32>
    %205 = arith.mulf %202, %168 : vector<8x32xf32>
    %206 = arith.mulf %201, %203 : vector<8x32xf32>
    %207 = arith.addf %205, %206 : vector<8x32xf32>
    %208 = math.tanh %207 : vector<8x32xf32>
    %209 = arith.mulf %204, %208 : vector<8x32xf32>
    %210 = vector.extract_strided_slice %191 {offsets = [0, 128], sizes = [8, 128], strides = [1, 1]} : vector<8x256xf32> to vector<8x128xf32>
    %211 = arith.negf %210 : vector<8x128xf32>
    %212 = math.exp %211 : vector<8x128xf32>
    %cst_44 = arith.constant 1.000000e+00 : f32
    %213 = vector.broadcast %cst_44 : f32 to vector<8x128xf32>
    %214 = arith.addf %213, %212 : vector<8x128xf32>
    %215 = arith.divf %213, %214 : vector<8x128xf32>
    %216 = math.tanh %210 : vector<8x128xf32>
    %217 = vector.extract_strided_slice %215 {offsets = [0, 0], sizes = [8, 32], strides = [1, 1]} : vector<8x128xf32> to vector<8x32xf32>
    %218 = vector.extract_strided_slice %215 {offsets = [0, 32], sizes = [8, 32], strides = [1, 1]} : vector<8x128xf32> to vector<8x32xf32>
    %219 = vector.extract_strided_slice %216 {offsets = [0, 64], sizes = [8, 32], strides = [1, 1]} : vector<8x128xf32> to vector<8x32xf32>
    %220 = vector.extract_strided_slice %215 {offsets = [0, 96], sizes = [8, 32], strides = [1, 1]} : vector<8x128xf32> to vector<8x32xf32>
    %221 = arith.mulf %218, %184 : vector<8x32xf32>
    %222 = arith.mulf %217, %219 : vector<8x32xf32>
    %223 = arith.addf %221, %222 : vector<8x32xf32>
    %224 = math.tanh %223 : vector<8x32xf32>
    %225 = arith.mulf %220, %224 : vector<8x32xf32>
    %c32_45 = arith.constant 32 : index
    %c0_46 = arith.constant 0 : index
    %226 = vector.load %arg9[%c32_45, %c0_46] : memref<64x32xf32, #tpu.memory_space<vmem>>, vector<8x32xf32>
    tpu.vector_store %arg9[%c32_45, %c0_46], %225 {strides = array<i32>} : memref<64x32xf32, #tpu.memory_space<vmem>>, vector<8x32xf32>,
    %227 = tpu.concatenate %209, %225 in 1 : vector<8x32xf32>, vector<8x32xf32> -> vector<8x64xf32>
    %cst_47 = arith.constant dense<0.000000e+00> : vector<8x256xf32>
    %228 = tpu.matmul %227, %4, %cst_47 {dimension_numbers = #tpu.dot_dimension_numbers<[1], [0], [0], [1], [0, 0, 1, 1], [], []>} : vector<8x64xf32>, vector<64x256xf32>, vector<8x256xf32> -> vector<8x256xf32>
    %229 = vector.broadcast %5 : vector<1x256xf32> to vector<8x256xf32>
    %230 = arith.addf %228, %229 : vector<8x256xf32>
    %231 = vector.extract_strided_slice %230 {offsets = [0, 0], sizes = [8, 128], strides = [1, 1]} : vector<8x256xf32> to vector<8x128xf32>
    %c48 = arith.constant 48 : index
    %c0_48 = arith.constant 0 : index
    %232 = vector.load %arg8[%c48, %c0_48] : memref<64x128xf32, #tpu.memory_space<vmem>>, vector<8x128xf32>
    %233 = arith.addf %231, %232 : vector<8x128xf32>
    %234 = arith.negf %233 : vector<8x128xf32>
    %235 = math.exp %234 : vector<8x128xf32>
    %cst_49 = arith.constant 1.000000e+00 : f32
    %236 = vector.broadcast %cst_49 : f32 to vector<8x128xf32>
    %237 = arith.addf %236, %235 : vector<8x128xf32>
    %238 = arith.divf %236, %237 : vector<8x128xf32>
    %239 = math.tanh %233 : vector<8x128xf32>
    %240 = vector.extract_strided_slice %238 {offsets = [0, 0], sizes = [8, 32], strides = [1, 1]} : vector<8x128xf32> to vector<8x32xf32>
    %241 = vector.extract_strided_slice %238 {offsets = [0, 32], sizes = [8, 32], strides = [1, 1]} : vector<8x128xf32> to vector<8x32xf32>
    %242 = vector.extract_strided_slice %239 {offsets = [0, 64], sizes = [8, 32], strides = [1, 1]} : vector<8x128xf32> to vector<8x32xf32>
    %243 = vector.extract_strided_slice %238 {offsets = [0, 96], sizes = [8, 32], strides = [1, 1]} : vector<8x128xf32> to vector<8x32xf32>
    %244 = arith.mulf %241, %207 : vector<8x32xf32>
    %245 = arith.mulf %240, %242 : vector<8x32xf32>
    %246 = arith.addf %244, %245 : vector<8x32xf32>
    %247 = math.tanh %246 : vector<8x32xf32>
    %248 = arith.mulf %243, %247 : vector<8x32xf32>
    %249 = vector.extract_strided_slice %230 {offsets = [0, 128], sizes = [8, 128], strides = [1, 1]} : vector<8x256xf32> to vector<8x128xf32>
    %250 = arith.negf %249 : vector<8x128xf32>
    %251 = math.exp %250 : vector<8x128xf32>
    %cst_50 = arith.constant 1.000000e+00 : f32
    %252 = vector.broadcast %cst_50 : f32 to vector<8x128xf32>
    %253 = arith.addf %252, %251 : vector<8x128xf32>
    %254 = arith.divf %252, %253 : vector<8x128xf32>
    %255 = math.tanh %249 : vector<8x128xf32>
    %256 = vector.extract_strided_slice %254 {offsets = [0, 0], sizes = [8, 32], strides = [1, 1]} : vector<8x128xf32> to vector<8x32xf32>
    %257 = vector.extract_strided_slice %254 {offsets = [0, 32], sizes = [8, 32], strides = [1, 1]} : vector<8x128xf32> to vector<8x32xf32>
    %258 = vector.extract_strided_slice %255 {offsets = [0, 64], sizes = [8, 32], strides = [1, 1]} : vector<8x128xf32> to vector<8x32xf32>
    %259 = vector.extract_strided_slice %254 {offsets = [0, 96], sizes = [8, 32], strides = [1, 1]} : vector<8x128xf32> to vector<8x32xf32>
    %260 = arith.mulf %257, %223 : vector<8x32xf32>
    %261 = arith.mulf %256, %258 : vector<8x32xf32>
    %262 = arith.addf %260, %261 : vector<8x32xf32>
    %263 = math.tanh %262 : vector<8x32xf32>
    %264 = arith.mulf %259, %263 : vector<8x32xf32>
    %c40_51 = arith.constant 40 : index
    %c0_52 = arith.constant 0 : index
    %265 = vector.load %arg9[%c40_51, %c0_52] : memref<64x32xf32, #tpu.memory_space<vmem>>, vector<8x32xf32>
    tpu.vector_store %arg9[%c40_51, %c0_52], %264 {strides = array<i32>} : memref<64x32xf32, #tpu.memory_space<vmem>>, vector<8x32xf32>,
    %266 = tpu.concatenate %248, %264 in 1 : vector<8x32xf32>, vector<8x32xf32> -> vector<8x64xf32>
    %cst_53 = arith.constant dense<0.000000e+00> : vector<8x256xf32>
    %267 = tpu.matmul %266, %4, %cst_53 {dimension_numbers = #tpu.dot_dimension_numbers<[1], [0], [0], [1], [0, 0, 1, 1], [], []>} : vector<8x64xf32>, vector<64x256xf32>, vector<8x256xf32> -> vector<8x256xf32>
    %268 = vector.broadcast %5 : vector<1x256xf32> to vector<8x256xf32>
    %269 = arith.addf %267, %268 : vector<8x256xf32>
    %270 = vector.extract_strided_slice %269 {offsets = [0, 0], sizes = [8, 128], strides = [1, 1]} : vector<8x256xf32> to vector<8x128xf32>
    %c56 = arith.constant 56 : index
    %c0_54 = arith.constant 0 : index
    %271 = vector.load %arg8[%c56, %c0_54] : memref<64x128xf32, #tpu.memory_space<vmem>>, vector<8x128xf32>
    %272 = arith.addf %270, %271 : vector<8x128xf32>
    %273 = arith.negf %272 : vector<8x128xf32>
    %274 = math.exp %273 : vector<8x128xf32>
    %cst_55 = arith.constant 1.000000e+00 : f32
    %275 = vector.broadcast %cst_55 : f32 to vector<8x128xf32>
    %276 = arith.addf %275, %274 : vector<8x128xf32>
    %277 = arith.divf %275, %276 : vector<8x128xf32>
    %278 = math.tanh %272 : vector<8x128xf32>
    %279 = vector.extract_strided_slice %277 {offsets = [0, 0], sizes = [8, 32], strides = [1, 1]} : vector<8x128xf32> to vector<8x32xf32>
    %280 = vector.extract_strided_slice %277 {offsets = [0, 32], sizes = [8, 32], strides = [1, 1]} : vector<8x128xf32> to vector<8x32xf32>
    %281 = vector.extract_strided_slice %278 {offsets = [0, 64], sizes = [8, 32], strides = [1, 1]} : vector<8x128xf32> to vector<8x32xf32>
    %282 = vector.extract_strided_slice %277 {offsets = [0, 96], sizes = [8, 32], strides = [1, 1]} : vector<8x128xf32> to vector<8x32xf32>
    %283 = arith.mulf %280, %246 : vector<8x32xf32>
    %284 = arith.mulf %279, %281 : vector<8x32xf32>
    %285 = arith.addf %283, %284 : vector<8x32xf32>
    %286 = math.tanh %285 : vector<8x32xf32>
    %287 = arith.mulf %282, %286 : vector<8x32xf32>
    %288 = vector.extract_strided_slice %269 {offsets = [0, 128], sizes = [8, 128], strides = [1, 1]} : vector<8x256xf32> to vector<8x128xf32>
    %289 = arith.negf %288 : vector<8x128xf32>
    %290 = math.exp %289 : vector<8x128xf32>
    %cst_56 = arith.constant 1.000000e+00 : f32
    %291 = vector.broadcast %cst_56 : f32 to vector<8x128xf32>
    %292 = arith.addf %291, %290 : vector<8x128xf32>
    %293 = arith.divf %291, %292 : vector<8x128xf32>
    %294 = math.tanh %288 : vector<8x128xf32>
    %295 = vector.extract_strided_slice %293 {offsets = [0, 0], sizes = [8, 32], strides = [1, 1]} : vector<8x128xf32> to vector<8x32xf32>
    %296 = vector.extract_strided_slice %293 {offsets = [0, 32], sizes = [8, 32], strides = [1, 1]} : vector<8x128xf32> to vector<8x32xf32>
    %297 = vector.extract_strided_slice %294 {offsets = [0, 64], sizes = [8, 32], strides = [1, 1]} : vector<8x128xf32> to vector<8x32xf32>
    %298 = vector.extract_strided_slice %293 {offsets = [0, 96], sizes = [8, 32], strides = [1, 1]} : vector<8x128xf32> to vector<8x32xf32>
    %299 = arith.mulf %296, %262 : vector<8x32xf32>
    %300 = arith.mulf %295, %297 : vector<8x32xf32>
    %301 = arith.addf %299, %300 : vector<8x32xf32>
    %302 = math.tanh %301 : vector<8x32xf32>
    %303 = arith.mulf %298, %302 : vector<8x32xf32>
    %c48_57 = arith.constant 48 : index
    %c0_58 = arith.constant 0 : index
    %304 = vector.load %arg9[%c48_57, %c0_58] : memref<64x32xf32, #tpu.memory_space<vmem>>, vector<8x32xf32>
    tpu.vector_store %arg9[%c48_57, %c0_58], %303 {strides = array<i32>} : memref<64x32xf32, #tpu.memory_space<vmem>>, vector<8x32xf32>,
    %305 = tpu.concatenate %287, %303 in 1 : vector<8x32xf32>, vector<8x32xf32> -> vector<8x64xf32>
    %cst_59 = arith.constant dense<0.000000e+00> : vector<8x256xf32>
    %306 = tpu.matmul %305, %4, %cst_59 {dimension_numbers = #tpu.dot_dimension_numbers<[1], [0], [0], [1], [0, 0, 1, 1], [], []>} : vector<8x64xf32>, vector<64x256xf32>, vector<8x256xf32> -> vector<8x256xf32>
    %307 = vector.broadcast %5 : vector<1x256xf32> to vector<8x256xf32>
    %308 = arith.addf %306, %307 : vector<8x256xf32>
    %309 = vector.extract_strided_slice %308 {offsets = [0, 128], sizes = [8, 128], strides = [1, 1]} : vector<8x256xf32> to vector<8x128xf32>
    %310 = arith.negf %309 : vector<8x128xf32>
    %311 = math.exp %310 : vector<8x128xf32>
    %cst_60 = arith.constant 1.000000e+00 : f32
    %312 = vector.broadcast %cst_60 : f32 to vector<8x128xf32>
    %313 = arith.addf %312, %311 : vector<8x128xf32>
    %314 = arith.divf %312, %313 : vector<8x128xf32>
    %315 = math.tanh %309 : vector<8x128xf32>
    %316 = vector.extract_strided_slice %314 {offsets = [0, 0], sizes = [8, 32], strides = [1, 1]} : vector<8x128xf32> to vector<8x32xf32>
    %317 = vector.extract_strided_slice %314 {offsets = [0, 32], sizes = [8, 32], strides = [1, 1]} : vector<8x128xf32> to vector<8x32xf32>
    %318 = vector.extract_strided_slice %315 {offsets = [0, 64], sizes = [8, 32], strides = [1, 1]} : vector<8x128xf32> to vector<8x32xf32>
    %319 = vector.extract_strided_slice %314 {offsets = [0, 96], sizes = [8, 32], strides = [1, 1]} : vector<8x128xf32> to vector<8x32xf32>
    %320 = arith.mulf %317, %301 : vector<8x32xf32>
    %321 = arith.mulf %316, %318 : vector<8x32xf32>
    %322 = arith.addf %320, %321 : vector<8x32xf32>
    %323 = math.tanh %322 : vector<8x32xf32>
    %324 = arith.mulf %319, %323 : vector<8x32xf32>
    %c56_61 = arith.constant 56 : index
    %c0_62 = arith.constant 0 : index
    %325 = vector.load %arg9[%c56_61, %c0_62] : memref<64x32xf32, #tpu.memory_space<vmem>>, vector<8x32xf32>
    tpu.vector_store %arg9[%c56_61, %c0_62], %324 {strides = array<i32>} : memref<64x32xf32, #tpu.memory_space<vmem>>, vector<8x32xf32>,
    %c0_63 = arith.constant 0 : index
    %c0_64 = arith.constant 0 : index
    %326 = vector.load %arg9[%c0_63, %c0_64] : memref<64x32xf32, #tpu.memory_space<vmem>>, vector<64x32xf32>
    %c0_65 = arith.constant 0 : index
    %c0_66 = arith.constant 0 : index
    %327 = vector.load %arg5[%c0_65, %c0_66] : memref<32x128xf32, #tpu.memory_space<vmem>>, vector<32x128xf32>
    %cst_67 = arith.constant dense<0.000000e+00> : vector<64x128xf32>
    %328 = tpu.matmul %326, %327, %cst_67 {dimension_numbers = #tpu.dot_dimension_numbers<[1], [0], [0], [1], [0, 0, 1, 1], [], []>} : vector<64x32xf32>, vector<32x128xf32>, vector<64x128xf32> -> vector<64x128xf32>
    %c0_68 = arith.constant 0 : index
    %c0_69 = arith.constant 0 : index
    %329 = vector.load %arg6[%c0_68, %c0_69] : memref<1x128xf32, #tpu.memory_space<vmem>>, vector<1x128xf32>
    %330 = vector.broadcast %329 : vector<1x128xf32> to vector<64x128xf32>
    %331 = arith.addf %328, %330 : vector<64x128xf32>
    %c0_70 = arith.constant 0 : index
    %c0_71 = arith.constant 0 : index
    %332 = vector.load %arg7[%c0_70, %c0_71] : memref<64x128xf32, #tpu.memory_space<vmem>>, vector<64x128xf32>
    tpu.vector_store %arg7[%c0_70, %c0_71], %331 {strides = array<i32>} : memref<64x128xf32, #tpu.memory_space<vmem>>, vector<64x128xf32>,
    return
  }
  func.func @transform_0(%arg0: i32) -> (i32, i32) {
    %c0_i32 = arith.constant 0 : i32
    %c0_i32_0 = arith.constant 0 : i32
    %c0_i32_1 = arith.constant 0 : i32
    return %c0_i32, %c0_i32_0 : i32, i32
  }
  func.func @transform_1(%arg0: i32) -> (i32, i32) {
    %c0_i32 = arith.constant 0 : i32
    %c0_i32_0 = arith.constant 0 : i32
    %c0_i32_1 = arith.constant 0 : i32
    return %c0_i32, %c0_i32_0 : i32, i32
  }
  func.func @transform_2(%arg0: i32) -> (i32, i32) {
    %c0_i32 = arith.constant 0 : i32
    %c0_i32_0 = arith.constant 0 : i32
    %c0_i32_1 = arith.constant 0 : i32
    return %c0_i32, %c0_i32_0 : i32, i32
  }
  func.func @transform_3(%arg0: i32) -> (i32, i32) {
    %c0_i32 = arith.constant 0 : i32
    %c0_i32_0 = arith.constant 0 : i32
    %c0_i32_1 = arith.constant 0 : i32
    return %c0_i32, %c0_i32_0 : i32, i32
  }
  func.func @transform_4(%arg0: i32) -> (i32, i32) {
    %c0_i32 = arith.constant 0 : i32
    %c0_i32_0 = arith.constant 0 : i32
    %c0_i32_1 = arith.constant 0 : i32
    return %c0_i32, %c0_i32_0 : i32, i32
  }
  func.func @transform_5(%arg0: i32) -> (i32, i32) {
    %c0_i32 = arith.constant 0 : i32
    %c0_i32_0 = arith.constant 0 : i32
    %c0_i32_1 = arith.constant 0 : i32
    return %c0_i32, %c0_i32_0 : i32, i32
  }
  func.func @transform_6(%arg0: i32) -> (i32, i32) {
    %c0_i32 = arith.constant 0 : i32
    %c0_i32_0 = arith.constant 0 : i32
    %c0_i32_1 = arith.constant 0 : i32
    return %c0_i32, %c0_i32_0 : i32, i32
  }
}

</mosaic_0001>

<bundles_post_ra>
// kernel: lstm_model_forward.1
= control target key start
LH: loop header
LB: loop body
LE: loop exit
PB: predicated region body
PF: predicated region fallthrough
CT: control target
= control target key end

     0   :  { %11 = vsyncpa [#allocation5], 0  ;;  %s1511_s24 = smov [#allocation4]   ;;  %s1512_s26 = smov 128   ;;  %s2079_s0 = inlined_call_operand.vmem [shape: f32[64,16], index: 0, kind: input, shape index: {}]   ;;  %s2080_s1 = inlined_call_operand.hbm [shape: f32[16,128], index: 1, kind: input, shape index: {}]   ;;  %s2081_s2 = inlined_call_operand.vmem [shape: f32[64,256], index: 2, kind: input, shape index: {}]   ;;  %s2082_s3 = inlined_call_operand.vmem [shape: f32[1,256], index: 3, kind: input, shape index: {}]   ;;  %s2083_s4 = inlined_call_operand.vmem [shape: f32[32,128], index: 4, kind: input, shape index: {}]   ;;  %s2084_s5 = inlined_call_operand.vmem [shape: f32[1,128], index: 5, kind: input, shape index: {}]   ;;  %s2085_s6 = inlined_call_operand.vmem [shape: f32[64,128], index: 6, kind: output, shape index: {}]  }
   0x1   :  { %s18_s23 = sshll.u32 %s2080_s1, 4  ;;  %s20_s25 = sshll.u32 %s1511_s24, 4  ;;  %s19_s23 = int_to_ptr.hbm [resolvable:$true] %s18_s23  ;;  %s21_s25 = int_to_ptr.vmem [resolvable:$true] %s20_s25 }
   0x2   :  { %s1513_s27 = smov 8  }
   0x3   :  { %26 = dma.hbm_to_vmem [thread:$0]  %s19_s23, 256, %s21_s25, [#allocation5], %s1512_s26, %s1512_s26, %s1513_s27  }
   0x4   :  { %1509 = dma.done.wait [#allocation5], 256  }
   0x5   :  { %1510 = vsyncadd [#allocation5], 4294967040  ;;  %v48_v0 = vld [vmem:[#allocation4 + $0x8] sm:$0xff]  ;;  %v47_v1 = vld [vmem:[#allocation4] sm:$0xff]  ;;  %vm49_vm0 = vcmask 130048   ;;  %v1514_v13 = vmov 0.0  }
   0x6   :  { %1344 = vmatpush.msra.mxu1 %v48_v0  ;;  %v41_v2 = vld [vmem:[%s2079_s0 + $0x10] sm:$0xff]  ;;  %88 = vmatpush.msra.mxu0 %v48_v0  ;;  %v1567_v4 = vld [vmem:[%s2081_s2 + $0x60] sm:$0xff]  ;;  %v42_v8 = vld [vmem:[%s2079_s0 + $0x18] sm:$0xff]  ;;  %s1515_s27 = smov 64   ;;  %vm212_vm5 = vcmask 261120   ;;  %vm145_vm6 = vcmask 523264  }
   0x7   :  { %v1561_v3 = vld [vmem:[%s2081_s2 + $0x70] sm:$0xff]  ;;  %1345 = vmatpush.msra.mxu2 %v48_v0  ;;  %1346 = vmatpush.msra.mxu3 %v48_v0  ;;  %v39_v5 = vld [vmem:[%s2079_s0] sm:$0xff]  ;;  %v1656_v43 = vld [vmem:[%s2081_s2 + $0x78] sm:$0xff] }
   0x8   :  { %1347 = vmatpush.msra.mxu1 %v47_v1  ;;  %89 = vmatpush.msra.mxu0 %v47_v1  ;;  %v1577_v6 = vld [vmem:[%s2081_s2 + $0x50] sm:$0xff]  ;;  %v1584_v7 = vld [vmem:[%s2081_s2 + $0x40] sm:$0xff]  ;;  %v1663_v44 = vld [vmem:[%s2081_s2 + $0x68] sm:$0xff] }
   0x9   :  { %1299 = vmatmul.msk.f32.vlgmr.msra.gmra.mxu1 %vm49_vm0, %v41_v2  ;;  %1348 = vmatpush.msra.mxu2 %v47_v1  ;;  %v1594_v9 = vld [vmem:[%s2081_s2 + $0x30] sm:$0xff]  ;;  %v1602_v10 = vld [vmem:[%s2081_s2 + $0x20] sm:$0xff]  ;;  %v1668_v45 = vld [vmem:[%s2081_s2 + $0x58] sm:$0xff] }
   0xa   :  { %157 = vmatpush.msrb.mxu1 %v1561_v3  ;;  %1297 = vmatmul.msk.f32.vlgmr.msra.gmra.mxu0 %vm49_vm0, %v39_v5  ;;  %v1609_v11 = vld [vmem:[%s2081_s2 + $0x10] sm:$0xff]  ;;  %v1616_v12 = vld [vmem:[%s2081_s2] sm:$0xff]  ;;  %v46_v46 = vld [vmem:[%s2079_s0 + $0x38] sm:$0xff] }
   0xb   :  { %225 = vmatpush.msrb.mxu2 %v1561_v3  ;;  %1349 = vmatpush.msra.mxu3 %v47_v1  ;;  %v1638_v16 = vld [vmem:[%s2082_s3] sm:$0x3]  ;;  %s1516_s3 = smov 32   ;;  %v1680_v47 = vld [vmem:[%s2081_s2 + $0x48] sm:$0xff]  ;;  %v1692_v49 = vld [vmem:[%s2081_s2 + $0x38] sm:$0xff] }
   0xc   :  { %158 = vmatpush.msrb.mxu1 %v1567_v4  ;;  %v1641_v17 = vperm.slane %v1638_v16, 0  ;;  %v43_v42 = vld [vmem:[%s2079_s0 + $0x20] sm:$0xff]  ;;  %905 = vmatpush.msrb.mxu0 %v1656_v43  ;;  %v44_v48 = vld [vmem:[%s2079_s0 + $0x28] sm:$0xff]  ;;  %v1710_v51 = vld [vmem:[%s2081_s2 + $0x18] sm:$0xff]  ;;  %v1780_v5 = vperm.slane %v1638_v16, 1 }
   0xd   :  { %226 = vmatpush.msrb.mxu2 %v1567_v4  ;;  %245 = vmatpush.msrb.mxu3 %v1656_v43  ;;  %v1701_v50 = vld [vmem:[%s2081_s2 + $0x28] sm:$0xff]  ;;  %v45_v52 = vld [vmem:[%s2079_s0 + $0x30] sm:$0xff] }
   0xe   :  { %159 = vmatpush.msrb.mxu1 %v1577_v6  ;;  %1301 = vmatmul.msk.f32.vlgmr.msra.gmra.mxu2 %vm49_vm0, %v43_v42  ;;  %v1733_v55 = vld [vmem:[%s2081_s2 + $0x8] sm:$0xff] }
   0xf   :  { %227 = vmatpush.msrb.mxu2 %v1577_v6  ;;  %246 = vmatpush.msrb.mxu3 %v1663_v44  ;;  %v40_v56 = vld [vmem:[%s2079_s0 + $0x8] sm:$0xff] }
  0x10   :  { %160 = vmatpush.msrb.mxu1 %v1584_v7  ;;  %1304 = vmatmul.msk.f32.vlgmr.msra.gmra.mxu3 %vm49_vm0, %v46_v46 }
  0x11   :  { %1300 = vmatmul.msk.f32.gmra.mxu1 %vm49_vm0, %v42_v8  ;;  %228 = vmatpush.msrb.mxu2 %v1584_v7 }
  0x12   :  { %161 = vmatpush.msrb.mxu1 %v1594_v9  ;;  %247 = vmatpush.msrb.mxu3 %v1668_v45 }
  0x13   :  { %229 = vmatpush.msrb.mxu2 %v1594_v9  ;;  %906 = vmatpush.msrb.mxu0 %v1663_v44 }
  0x14   :  { %162 = vmatpush.msrb.mxu1 %v1602_v10  ;;  %248 = vmatpush.msrb.mxu3 %v1680_v47 }
  0x15   :  { %230 = vmatpush.msrb.mxu2 %v1602_v10  ;;  %907 = vmatpush.msrb.mxu0 %v1668_v45 }
  0x16   :  { %163 = vmatpush.msrb.mxu1 %v1609_v11  ;;  %1302 = vmatmul.msk.f32.gmra.mxu2 %vm49_vm0, %v44_v48 }
  0x17   :  { %231 = vmatpush.msrb.mxu2 %v1609_v11  ;;  %249 = vmatpush.msrb.mxu3 %v1692_v49 }
  0x18   :  { %164 = vmatpush.msrb.mxu1 %v1616_v12  ;;  %908 = vmatpush.msrb.mxu0 %v1680_v47 }
  0x19   :  { %165 = vmatmul.f32.vlgmr.msrb.gmra.mxu1 %v1514_v13  ;;  %232 = vmatpush.msrb.mxu2 %v1616_v12 }
  0x1a   :  { %357 = vmatpush.msra.mxu1 %v1561_v3  ;;  %250 = vmatpush.msrb.mxu3 %v1701_v50 }
  0x1b   :  { %377 = vmatpush.msra.mxu2 %v1656_v43  ;;  %909 = vmatpush.msrb.mxu0 %v1692_v49 }
  0x1c   :  { %358 = vmatpush.msra.mxu1 %v1567_v4  ;;  %251 = vmatpush.msrb.mxu3 %v1710_v51 }
  0x1d   :  { %378 = vmatpush.msra.mxu2 %v1663_v44  ;;  %910 = vmatpush.msrb.mxu0 %v1701_v50 }
  0x1e   :  { %359 = vmatpush.msra.mxu1 %v1577_v6  ;;  %1303 = vmatmul.msk.f32.gmra.mxu2 %vm49_vm0, %v45_v52 }
  0x1f   :  { %379 = vmatpush.msra.mxu2 %v1668_v45  ;;  %911 = vmatpush.msrb.mxu0 %v1710_v51 }
  0x20   :  { %360 = vmatpush.msra.mxu1 %v1584_v7  ;;  %252 = vmatpush.msrb.mxu3 %v1733_v55 }
  0x21   :  { %380 = vmatpush.msra.mxu2 %v1680_v47  ;;  %1298 = vmatmul.msk.f32.gmra.mxu0 %vm49_vm0, %v40_v56 }
  0x22   :  { %361 = vmatpush.msra.mxu1 %v1594_v9  ;;  %489 = vmatpush.msra.mxu3 %v1561_v3 }
  0x23   :  { %381 = vmatpush.msra.mxu2 %v1692_v49  ;;  %912 = vmatpush.msrb.mxu0 %v1733_v55 }
  0x24   :  { %362 = vmatpush.msra.mxu1 %v1602_v10  ;;  %490 = vmatpush.msra.mxu3 %v1567_v4 }
  0x25   :  { %382 = vmatpush.msra.mxu2 %v1701_v50 }
  0x26   :  { %363 = vmatpush.msra.mxu1 %v1609_v11  ;;  %491 = vmatpush.msra.mxu3 %v1577_v6 }
  0x27   :  { %383 = vmatpush.msra.mxu2 %v1710_v51 }
  0x28   :  { %364 = vmatpush.msra.mxu1 %v1616_v12  ;;  %492 = vmatpush.msra.mxu3 %v1584_v7 }
  0x29   :  { %384 = vmatpush.msra.mxu2 %v1733_v55 }
  0x2a   :  { %509 = vmatpush.msrb.mxu1 %v1656_v43  ;;  %493 = vmatpush.msra.mxu3 %v1594_v9 }
  0x2c   :  { %510 = vmatpush.msrb.mxu1 %v1663_v44  ;;  %494 = vmatpush.msra.mxu3 %v1602_v10 }
  0x2e   :  { %511 = vmatpush.msrb.mxu1 %v1668_v45  ;;  %495 = vmatpush.msra.mxu3 %v1609_v11 }
  0x30   :  { %512 = vmatpush.msrb.mxu1 %v1680_v47  ;;  %496 = vmatpush.msra.mxu3 %v1616_v12 }
  0x32   :  { %513 = vmatpush.msrb.mxu1 %v1692_v49 }
  0x34   :  { %514 = vmatpush.msrb.mxu1 %v1701_v50 }
  0x36   :  { %515 = vmatpush.msrb.mxu1 %v1710_v51 }
  0x38   :  { %516 = vmatpush.msrb.mxu1 %v1733_v55 }
  0x86   :  { %v1631_v14 = vpop.f32.mrf.mxu1 }
  0x87   :  { %v91_v19 = vpop.f32.mrf.mxu0 }
  0x8e   :  { %v1633_v15 = vpop.f32.mrf.mxu1 }
  0x91   :  { %v1770_v59 = vpop.f32.mrf.mxu2 }
  0x93   :  { %v1776_v62 = vpop.f32.mrf.mxu3 }
  0x96   :  { %v166_v18 = vpop.f32.mrf.mxu1 }
  0x97   :  { %v167_v20 = vadd.f32 %v166_v18, %v1641_v17 }
  0x99   :  { %v170_v21 = vadd.f32 %v167_v20, %v91_v19  ;;  %v1772_v60 = vpop.f32.mrf.mxu2 }
  0x9b   :  { %1357 = vtanh.f32 %v170_v21  ;;  %v1305_v23 = vmul.f32 -1.442695, %v170_v21 }
  0x9d   :  { %1359 = vpow2.f32 %v1305_v23 }
  0x9e   :  { %v94_v0 = vpop.f32.mrf.mxu0 }
  0xa1   :  { %v1358_v22 = vpop.eup %1357  ;;  %v1774_v61 = vpop.f32.mrf.mxu2 }
  0xa2   :  { %193 = vrot.lane.b32.xlu0 %v1358_v22, %s1515_s27 }
  0xa3   :  { %v1360_v24 = vpop.eup %1359 }
  0xa4   :  { %v174_v25 = vadd.f32 1.0, %v1360_v24 }
  0xa6   :  { %1361 = vrcp.f32 %v174_v25  ;;  %v186_v31 = vand.u32 2147483648, %v174_v25  ;;  %vm180_vm2 = vweird.f32 %v174_v25  ;;  %v184_v32 = vand.u32 2147483647, %v174_v25 }
  0xa8   :  { %v187_v34 = vor.u32 1.1754944e-38, %v186_v31  ;;  %vm185_vm4 = vcmp.eq.f32.partialorder %v184_v32, 8.507059e+37 }
  0xac   :  { %v1362_v26 = vpop.eup %1361 }
  0xad   :  { %v176_v27 = vmul.f32 %v1362_v26, %v174_v25  ;;  %vm181_vm1 = vweird.f32 %v1362_v26 }
  0xae   :  { %vm182_vm3 = vmor %vm180_vm2, %vm181_vm1 }
  0xaf   :  { %v177_v28 = vsub.f32 1.0, %v176_v27 }
  0xb1   :  { %v178_v29 = vmul.f32 %v1362_v26, %v177_v28 }
  0xb3   :  { %v179_v30 = vadd.f32 %v1362_v26, %v178_v29 }
  0xb5   :  { %v183_v33 = vsel %vm182_vm3, %v1362_v26, %v179_v30 }
  0xb6   :  { %v188_v36 = vsel %vm185_vm4, %v187_v34, %v183_v33 }
  0xb7   :  { %v191_v38 = vmul.f32 0.0, %v188_v36 }
 0x114   :  { %v194_v35 = vpop.permute.xlu0 %193 }
 0x115   :  { %v196_v37 = vmul.f32 %v194_v35, %v188_v36 }
 0x117   :  { %198 = vrot.lane.b32.xlu0 %v196_v37, %s1516_s3 }
 0x189   :  { %v199_v39 = vpop.permute.xlu0 %198 }
 0x18a   :  { %v1646_v40 = vadd.f32 %v199_v39, %v191_v38 }
 0x18c   :  { %1363 = vtanh.f32 %v1646_v40 }
 0x192   :  { %v1364_v41 = vpop.eup %1363 }
 0x193   :  { %204 = vrot.lane.b32.xlu1 %v1364_v41, %s1515_s27 }
 0x205   :  { %v205_v53 = vpop.permute.xlu1 %204 }
 0x206   :  { %v207_v54 = vmul.f32 %v205_v53, %v188_v36 }
 0x208   :  { %209 = vrot.lane.b32.xlu1 %v207_v54, %s1516_s3 }
 0x27a   :  { %v210_v57 = vpop.permute.xlu1 %209 }
 0x27b   :  { %v213_v58 = vsel %vm212_vm5, %v210_v57, 0.0 }
 0x27c   :  { %1306 = vmatmul.msk.f32.vlgmr.msrb.gmra.mxu2 %vm145_vm6, %v213_v58  ;;  %1307 = vmatmul.msk.f32.vlgmr.msrb.gmra.mxu3 %vm145_vm6, %v213_v58 }
 0x27d   :  { %621 = vmatpush.msrb.mxu2 %v1561_v3  ;;  %641 = vmatpush.msrb.mxu3 %v1656_v43 }
 0x27f   :  { %622 = vmatpush.msrb.mxu2 %v1567_v4  ;;  %642 = vmatpush.msrb.mxu3 %v1663_v44 }
 0x281   :  { %623 = vmatpush.msrb.mxu2 %v1577_v6  ;;  %643 = vmatpush.msrb.mxu3 %v1668_v45 }
 0x283   :  { %624 = vmatpush.msrb.mxu2 %v1584_v7  ;;  %644 = vmatpush.msrb.mxu3 %v1680_v47 }
 0x285   :  { %625 = vmatpush.msrb.mxu2 %v1594_v9  ;;  %645 = vmatpush.msrb.mxu3 %v1692_v49 }
 0x287   :  { %626 = vmatpush.msrb.mxu2 %v1602_v10  ;;  %646 = vmatpush.msrb.mxu3 %v1701_v50 }
 0x289   :  { %627 = vmatpush.msrb.mxu2 %v1609_v11  ;;  %647 = vmatpush.msrb.mxu3 %v1710_v51 }
 0x28b   :  { %628 = vmatpush.msrb.mxu2 %v1616_v12  ;;  %648 = vmatpush.msrb.mxu3 %v1733_v55 }
 0x2ff   :  { %v234_v63 = vpop.f32.mrf.mxu2  ;;  %v254_v8 = vpop.f32.mrf.mxu3 }
 0x300   :  { %v235_v1 = vadd.f32 %v234_v63, %v1641_v17  ;;  %v255_v13 = vadd.f32 %v254_v8, %v1780_v5 }
 0x302   :  { %v258_v2 = vadd.f32 %v235_v1, %v94_v0  ;;  %v1309_v21 = vmul.f32 -1.442695, %v255_v13 }
 0x304   :  { %1365 = vtanh.f32 %v258_v2  ;;  %v1308_v20 = vmul.f32 -1.442695, %v258_v2 }
 0x305   :  { %1367 = vtanh.f32 %v255_v13 }
 0x306   :  { %1369 = vpow2.f32 %v1308_v20 }
 0x307   :  { %1371 = vpow2.f32 %v1309_v21 }
 0x30a   :  { %v1366_v18 = vpop.eup %1365 }
 0x30b   :  { %281 = vrot.lane.b32.xlu2 %v1366_v18, %s1515_s27  ;;  %v1368_v19 = vpop.eup %1367 }
 0x30c   :  { %v1370_v22 = vpop.eup %1369 }
 0x30d   :  { %v262_v23 = vadd.f32 1.0, %v1370_v22  ;;  %v1372_v16 = vpop.eup %1371 }
 0x30e   :  { %v299_v24 = vadd.f32 1.0, %v1372_v16 }
 0x30f   :  { %1373 = vrcp.f32 %v262_v23  ;;  %v274_v33 = vand.u32 2147483648, %v262_v23  ;;  %vm268_vm8 = vweird.f32 %v262_v23  ;;  %v272_v34 = vand.u32 2147483647, %v262_v23 }
 0x310   :  { %1375 = vrcp.f32 %v299_v24  ;;  %v311_v46 = vand.u32 2147483648, %v299_v24  ;;  %vm305_vm12 = vweird.f32 %v299_v24  ;;  %v309_v48 = vand.u32 2147483647, %v299_v24 }
 0x311   :  { %v275_v37 = vor.u32 1.1754944e-38, %v274_v33  ;;  %vm273_vm10 = vcmp.eq.f32.partialorder %v272_v34, 8.507059e+37 }
 0x312   :  { %v312_v53 = vor.u32 1.1754944e-38, %v311_v46  ;;  %vm310_vm14 = vcmp.eq.f32.partialorder %v309_v48, 8.507059e+37 }
 0x313   :  { %318 = vrot.lane.b32.xlu2 %v1368_v19, %s1515_s27 }
 0x315   :  { %v1374_v25 = vpop.eup %1373 }
 0x316   :  { %v264_v26 = vmul.f32 %v1374_v25, %v262_v23  ;;  %v1376_v28 = vpop.eup %1375  ;;  %vm269_vm7 = vweird.f32 %v1374_v25 }
 0x317   :  { %v301_v30 = vmul.f32 %v1376_v28, %v299_v24  ;;  %vm270_vm9 = vmor %vm268_vm8, %vm269_vm7  ;;  %vm306_vm11 = vweird.f32 %v1376_v28 }
 0x318   :  { %v265_v27 = vsub.f32 1.0, %v264_v26  ;;  %vm307_vm13 = vmor %vm305_vm12, %vm306_vm11 }
 0x319   :  { %v302_v32 = vsub.f32 1.0, %v301_v30 }
 0x31a   :  { %v266_v29 = vmul.f32 %v1374_v25, %v265_v27 }
 0x31b   :  { %v303_v36 = vmul.f32 %v1376_v28, %v302_v32 }
 0x31c   :  { %v267_v31 = vadd.f32 %v1374_v25, %v266_v29 }
 0x31d   :  { %v304_v42 = vadd.f32 %v1376_v28, %v303_v36 }
 0x31e   :  { %v271_v35 = vsel %vm270_vm9, %v1374_v25, %v267_v31 }
 0x31f   :  { %v276_v39 = vsel %vm273_vm10, %v275_v37, %v271_v35  ;;  %v308_v52 = vsel %vm307_vm13, %v1376_v28, %v304_v42 }
 0x320   :  { %v313_v54 = vsel %vm310_vm14, %v312_v53, %v308_v52  ;;  %v279_v58 = vmul.f32 %v276_v39, %v1646_v40 }
 0x321   :  { %v316_v1 = vmul.f32 0.0, %v313_v54 }
 0x365   :  { %v282_v38 = vpop.permute.xlu2 %281 }
 0x366   :  { %v284_v41 = vmul.f32 %v282_v38, %v276_v39 }
 0x368   :  { %286 = vrot.lane.b32.xlu0 %v284_v41, %s1516_s3 }
 0x36d   :  { %v319_v56 = vpop.permute.xlu2 %318 }
 0x36e   :  { %v321_v57 = vmul.f32 %v319_v56, %v313_v54 }
 0x370   :  { %323 = vrot.lane.b32.xlu1 %v321_v57, %s1516_s3 }
 0x3da   :  { %v287_v63 = vpop.permute.xlu0 %286 }
 0x3db   :  { %v1788_v0 = vadd.f32 %v287_v63, %v279_v58 }
 0x3dd   :  { %1377 = vtanh.f32 %v1788_v0 }
 0x3e2   :  { %v324_v2 = vpop.permute.xlu1 %323 }
 0x3e3   :  { %v1378_v8 = vpop.eup %1377  ;;  %v1791_v13 = vadd.f32 %v324_v2, %v316_v1 }
 0x3e4   :  { %292 = vrot.lane.b32.xlu2 %v1378_v8, %s1515_s27 }
 0x3e5   :  { %1379 = vtanh.f32 %v1791_v13 }
 0x3eb   :  { %v1380_v18 = vpop.eup %1379 }
 0x3ec   :  { %329 = vrot.lane.b32.xlu0 %v1380_v18, %s1515_s27 }
 0x43e   :  { %v293_v19 = vpop.permute.xlu2 %292 }
 0x43f   :  { %v295_v20 = vmul.f32 %v293_v19, %v276_v39 }
 0x441   :  { %339 = vrot.lane.b32.xlu1 %v295_v20, %s1516_s3 }
 0x45e   :  { %v330_v40 = vpop.permute.xlu0 %329 }
 0x45f   :  { %v1797_v21 = vmul.f32 %v330_v40, %v313_v54 }
 0x461   :  { %342 = vrot.lane.b32.xlu2 %v1797_v21, %s1515_s27 }
 0x4b3   :  { %v340_v22 = vpop.permute.xlu1 %339 }
 0x4bb   :  { %v343_v23 = vpop.permute.xlu2 %342 }
 0x4bc   :  { %v345_v16 = vsel %vm212_vm5, %v340_v22, %v343_v23 }
 0x4bd   :  { %1310 = vmatmul.msk.f32.vlgmr.msra.gmra.mxu1 %vm145_vm6, %v345_v16  ;;  %1311 = vmatmul.msk.f32.vlgmr.msra.gmra.mxu2 %vm145_vm6, %v345_v16 }
 0x4be   :  { %753 = vmatpush.msra.mxu1 %v1561_v3  ;;  %773 = vmatpush.msra.mxu2 %v1656_v43 }
 0x4c0   :  { %754 = vmatpush.msra.mxu1 %v1567_v4  ;;  %774 = vmatpush.msra.mxu2 %v1663_v44 }
 0x4c2   :  { %755 = vmatpush.msra.mxu1 %v1577_v6  ;;  %775 = vmatpush.msra.mxu2 %v1668_v45 }
 0x4c4   :  { %756 = vmatpush.msra.mxu1 %v1584_v7  ;;  %776 = vmatpush.msra.mxu2 %v1680_v47 }
 0x4c6   :  { %757 = vmatpush.msra.mxu1 %v1594_v9  ;;  %777 = vmatpush.msra.mxu2 %v1692_v49 }
 0x4c8   :  { %758 = vmatpush.msra.mxu1 %v1602_v10  ;;  %778 = vmatpush.msra.mxu2 %v1701_v50 }
 0x4ca   :  { %759 = vmatpush.msra.mxu1 %v1609_v11  ;;  %779 = vmatpush.msra.mxu2 %v1710_v51 }
 0x4cc   :  { %760 = vmatpush.msra.mxu1 %v1616_v12  ;;  %780 = vmatpush.msra.mxu2 %v1733_v55 }
 0x53a   :  { %v366_v24 = vpop.f32.mrf.mxu1 }
 0x53b   :  { %v367_v25 = vadd.f32 %v366_v24, %v1641_v17 }
 0x53d   :  { %v390_v26 = vadd.f32 %v367_v25, %v1631_v14 }
 0x53f   :  { %1381 = vtanh.f32 %v390_v26  ;;  %v1312_v31 = vmul.f32 -1.442695, %v390_v26 }
 0x540   :  { %v386_v27 = vpop.f32.mrf.mxu2 }
 0x541   :  { %v387_v28 = vadd.f32 %v386_v27, %v1780_v5 }
 0x543   :  { %1383 = vtanh.f32 %v387_v28  ;;  %v1313_v32 = vmul.f32 -1.442695, %v387_v28 }
 0x544   :  { %1385 = vpow2.f32 %v1312_v31 }
 0x545   :  { %v1382_v29 = vpop.eup %1381  ;;  %1387 = vpow2.f32 %v1313_v32 }
 0x546   :  { %413 = vrot.lane.b32.xlu0 %v1382_v29, %s1515_s27 }
 0x549   :  { %v1384_v30 = vpop.eup %1383 }
 0x54a   :  { %450 = vrot.lane.b32.xlu1 %v1384_v30, %s1515_s27  ;;  %v1386_v33 = vpop.eup %1385 }
 0x54b   :  { %v394_v34 = vadd.f32 1.0, %v1386_v33  ;;  %v1388_v35 = vpop.eup %1387 }
 0x54c   :  { %v431_v14 = vadd.f32 1.0, %v1388_v35 }
 0x54d   :  { %1389 = vrcp.f32 %v394_v34  ;;  %v406_v53 = vand.u32 2147483648, %v394_v34  ;;  %vm400_vm0 = vweird.f32 %v394_v34  ;;  %v404_v54 = vand.u32 2147483647, %v394_v34 }
 0x54e   :  { %1391 = vrcp.f32 %v431_v14  ;;  %v443_v63 = vand.u32 2147483648, %v431_v14  ;;  %vm437_vm4 = vweird.f32 %v431_v14  ;;  %v441_v1 = vand.u32 2147483647, %v431_v14 }
 0x54f   :  { %v407_v58 = vor.u32 1.1754944e-38, %v406_v53  ;;  %vm405_vm3 = vcmp.eq.f32.partialorder %v404_v54, 8.507059e+37 }
 0x550   :  { %v444_v20 = vor.u32 1.1754944e-38, %v443_v63  ;;  %vm442_vm8 = vcmp.eq.f32.partialorder %v441_v1, 8.507059e+37 }
 0x553   :  { %v1390_v36 = vpop.eup %1389 }
 0x554   :  { %v396_v37 = vmul.f32 %v1390_v36, %v394_v34  ;;  %v1392_v38 = vpop.eup %1391  ;;  %vm401_vm15 = vweird.f32 %v1390_v36 }
 0x555   :  { %v433_v41 = vmul.f32 %v1392_v38, %v431_v14  ;;  %vm402_vm1 = vmor %vm400_vm0, %vm401_vm15  ;;  %vm438_vm2 = vweird.f32 %v1392_v38 }
 0x556   :  { %v397_v39 = vsub.f32 1.0, %v396_v37  ;;  %vm439_vm7 = vmor %vm437_vm4, %vm438_vm2 }
 0x557   :  { %v434_v46 = vsub.f32 1.0, %v433_v41 }
 0x558   :  { %v398_v42 = vmul.f32 %v1390_v36, %v397_v39 }
 0x559   :  { %v435_v52 = vmul.f32 %v1392_v38, %v434_v46 }
 0x55a   :  { %v399_v48 = vadd.f32 %v1390_v36, %v398_v42 }
 0x55b   :  { %v436_v57 = vadd.f32 %v1392_v38, %v435_v52 }
 0x55c   :  { %v403_v56 = vsel %vm402_vm1, %v1390_v36, %v399_v48 }
 0x55d   :  { %v408_v8 = vsel %vm405_vm3, %v407_v58, %v403_v56  ;;  %v440_v19 = vsel %vm439_vm7, %v1392_v38, %v436_v57 }
 0x55e   :  { %v445_v22 = vsel %vm442_vm8, %v444_v20, %v440_v19  ;;  %v411_v16 = vmul.f32 %v408_v8, %v1788_v0 }
 0x55f   :  { %v448_v27 = vmul.f32 %v445_v22, %v1791_v13 }
 0x5b8   :  { %v414_v2 = vpop.permute.xlu0 %413 }
 0x5b9   :  { %v416_v18 = vmul.f32 %v414_v2, %v408_v8 }
 0x5bb   :  { %418 = vrot.lane.b32.xlu2 %v416_v18, %s1516_s3 }
 0x5bc   :  { %v451_v40 = vpop.permute.xlu1 %450 }
 0x5bd   :  { %v453_v23 = vmul.f32 %v451_v40, %v445_v22 }
 0x5bf   :  { %455 = vrot.lane.b32.xlu0 %v453_v23, %s1516_s3 }
 0x615   :  { %v419_v24 = vpop.permute.xlu2 %418 }
 0x616   :  { %v1828_v25 = vadd.f32 %v419_v24, %v411_v16 }
 0x618   :  { %1393 = vtanh.f32 %v1828_v25 }
 0x61e   :  { %v1394_v26 = vpop.eup %1393 }
 0x61f   :  { %424 = vrot.lane.b32.xlu1 %v1394_v26, %s1515_s27 }
 0x631   :  { %v456_v28 = vpop.permute.xlu0 %455 }
 0x632   :  { %v1833_v29 = vadd.f32 %v456_v28, %v448_v27 }
 0x634   :  { %1395 = vtanh.f32 %v1833_v29 }
 0x63a   :  { %v1396_v30 = vpop.eup %1395 }
 0x63b   :  { %461 = vrot.lane.b32.xlu2 %v1396_v30, %s1515_s27 }
 0x691   :  { %v425_v31 = vpop.permute.xlu1 %424 }
 0x692   :  { %v427_v0 = vmul.f32 %v425_v31, %v408_v8 }
 0x694   :  { %471 = vrot.lane.b32.xlu0 %v427_v0, %s1516_s3 }
 0x695   :  { %v462_v32 = vpop.permute.xlu2 %461 }
 0x696   :  { %v1838_v33 = vmul.f32 %v462_v32, %v445_v22 }
 0x698   :  { %474 = vrot.lane.b32.xlu1 %v1838_v33, %s1515_s27 }
 0x706   :  { %v472_v34 = vpop.permute.xlu0 %471 }
 0x70a   :  { %v475_v13 = vpop.permute.xlu1 %474 }
 0x70b   :  { %v477_v35 = vsel %vm212_vm5, %v472_v34, %v475_v13 }
 0x70c   :  { %1314 = vmatmul.msk.f32.vlgmr.msra.gmra.mxu3 %vm145_vm6, %v477_v35  ;;  %1315 = vmatmul.msk.f32.vlgmr.msrb.gmra.mxu1 %vm145_vm6, %v477_v35 }
 0x70d   :  { %885 = vmatpush.msra.mxu3 %v1561_v3  ;;  %1017 = vmatpush.msrb.mxu1 %v1561_v3 }
 0x70f   :  { %886 = vmatpush.msra.mxu3 %v1567_v4  ;;  %1018 = vmatpush.msrb.mxu1 %v1567_v4 }
 0x711   :  { %887 = vmatpush.msra.mxu3 %v1577_v6  ;;  %1019 = vmatpush.msrb.mxu1 %v1577_v6 }
 0x713   :  { %888 = vmatpush.msra.mxu3 %v1584_v7  ;;  %1020 = vmatpush.msrb.mxu1 %v1584_v7 }
 0x715   :  { %889 = vmatpush.msra.mxu3 %v1594_v9  ;;  %1021 = vmatpush.msrb.mxu1 %v1594_v9 }
 0x717   :  { %890 = vmatpush.msra.mxu3 %v1602_v10  ;;  %1022 = vmatpush.msrb.mxu1 %v1602_v10 }
 0x719   :  { %891 = vmatpush.msra.mxu3 %v1609_v11  ;;  %1023 = vmatpush.msrb.mxu1 %v1609_v11 }
 0x71b   :  { %892 = vmatpush.msra.mxu3 %v1616_v12  ;;  %1024 = vmatpush.msrb.mxu1 %v1616_v12 }
 0x789   :  { %v518_v3 = vpop.f32.mrf.mxu1 }
 0x78a   :  { %v519_v4 = vadd.f32 %v518_v3, %v1780_v5 }
 0x78c   :  { %1397 = vtanh.f32 %v519_v4  ;;  %v1317_v37 = vmul.f32 -1.442695, %v519_v4 }
 0x78f   :  { %v498_v6 = vpop.f32.mrf.mxu3 }
 0x790   :  { %v499_v7 = vadd.f32 %v498_v6, %v1641_v17 }
 0x792   :  { %v1398_v9 = vpop.eup %1397  ;;  %v522_v14 = vadd.f32 %v499_v7, %v1633_v15 }
 0x793   :  { %582 = vrot.lane.b32.xlu0 %v1398_v9, %s1515_s27 }
 0x794   :  { %1399 = vtanh.f32 %v522_v14  ;;  %v1316_v11 = vmul.f32 -1.442695, %v522_v14 }
 0x796   :  { %1401 = vpow2.f32 %v1316_v11 }
 0x79a   :  { %v1400_v10 = vpop.eup %1399 }
 0x79b   :  { %545 = vrot.lane.b32.xlu2 %v1400_v10, %s1515_s27 }
 0x79c   :  { %v1402_v36 = vpop.eup %1401 }
 0x79d   :  { %v526_v12 = vadd.f32 1.0, %v1402_v36 }
 0x79f   :  { %1403 = vrcp.f32 %v526_v12  ;;  %v538_v53 = vand.u32 2147483648, %v526_v12  ;;  %vm532_vm10 = vweird.f32 %v526_v12  ;;  %v536_v54 = vand.u32 2147483647, %v526_v12 }
 0x7a0   :  { %1405 = vpow2.f32 %v1317_v37 }
 0x7a1   :  { %v539_v58 = vor.u32 1.1754944e-38, %v538_v53  ;;  %vm537_vm12 = vcmp.eq.f32.partialorder %v536_v54, 8.507059e+37 }
 0x7a5   :  { %v1404_v38 = vpop.eup %1403 }
 0x7a6   :  { %v1406_v39 = vpop.eup %1405  ;;  %v528_v41 = vmul.f32 %v1404_v38, %v526_v12  ;;  %vm533_vm9 = vweird.f32 %v1404_v38 }
 0x7a7   :  { %v563_v42 = vadd.f32 1.0, %v1406_v39  ;;  %vm534_vm11 = vmor %vm532_vm10, %vm533_vm9 }
 0x7a8   :  { %v529_v46 = vsub.f32 1.0, %v528_v41 }
 0x7a9   :  { %1407 = vrcp.f32 %v563_v42  ;;  %v575_v20 = vand.u32 2147483648, %v563_v42  ;;  %vm569_vm14 = vweird.f32 %v563_v42  ;;  %v573_v40 = vand.u32 2147483647, %v563_v42 }
 0x7aa   :  { %v530_v15 = vmul.f32 %v1404_v38, %v529_v46 }
 0x7ab   :  { %v576_v23 = vor.u32 1.1754944e-38, %v575_v20  ;;  %vm574_vm0 = vcmp.eq.f32.partialorder %v573_v40, 8.507059e+37 }
 0x7ac   :  { %v531_v48 = vadd.f32 %v1404_v38, %v530_v15 }
 0x7ae   :  { %v535_v56 = vsel %vm534_vm11, %v1404_v38, %v531_v48 }
 0x7af   :  { %v1408_v52 = vpop.eup %1407  ;;  %v540_v1 = vsel %vm537_vm12, %v539_v58, %v535_v56 }
 0x7b0   :  { %v565_v57 = vmul.f32 %v1408_v52, %v563_v42  ;;  %vm570_vm13 = vweird.f32 %v1408_v52  ;;  %v543_v31 = vmul.f32 %v540_v1, %v1828_v25 }
 0x7b1   :  { %vm571_vm15 = vmor %vm569_vm14, %vm570_vm13 }
 0x7b2   :  { %v566_v8 = vsub.f32 1.0, %v565_v57 }
 0x7b4   :  { %v567_v18 = vmul.f32 %v1408_v52, %v566_v8 }
 0x7b6   :  { %v568_v19 = vadd.f32 %v1408_v52, %v567_v18 }
 0x7b8   :  { %v572_v22 = vsel %vm571_vm15, %v1408_v52, %v568_v19 }
 0x7b9   :  { %v577_v24 = vsel %vm574_vm0, %v576_v23, %v572_v22 }
 0x7ba   :  { %v580_v27 = vmul.f32 %v577_v24, %v1833_v29 }
 0x7f5   :  { %v546_v63 = vpop.permute.xlu2 %545 }
 0x7f6   :  { %v548_v2 = vmul.f32 %v546_v63, %v540_v1 }
 0x7f8   :  { %550 = vrot.lane.b32.xlu1 %v548_v2, %s1516_s3 }
 0x805   :  { %v583_v16 = vpop.permute.xlu0 %582 }
 0x806   :  { %v585_v26 = vmul.f32 %v583_v16, %v577_v24 }
 0x808   :  { %587 = vrot.lane.b32.xlu2 %v585_v26, %s1516_s3 }
 0x862   :  { %v588_v28 = vpop.permute.xlu2 %587 }
 0x863   :  { %v1869_v30 = vadd.f32 %v588_v28, %v580_v27 }
 0x865   :  { %1409 = vtanh.f32 %v1869_v30 }
 0x86a   :  { %v551_v0 = vpop.permute.xlu1 %550 }
 0x86b   :  { %v1410_v32 = vpop.eup %1409  ;;  %v1873_v34 = vadd.f32 %v551_v0, %v543_v31 }
 0x86c   :  { %593 = vrot.lane.b32.xlu1 %v1410_v32, %s1515_s27 }
 0x86d   :  { %1411 = vtanh.f32 %v1873_v34 }
 0x873   :  { %v1412_v13 = vpop.eup %1411 }
 0x874   :  { %556 = vrot.lane.b32.xlu0 %v1412_v13, %s1515_s27 }
 0x8de   :  { %v594_v35 = vpop.permute.xlu1 %593 }
 0x8df   :  { %v1878_v29 = vmul.f32 %v594_v35, %v577_v24 }
 0x8e1   :  { %606 = vrot.lane.b32.xlu0 %v1878_v29, %s1515_s27 }
 0x8e6   :  { %v557_v3 = vpop.permute.xlu0 %556 }
 0x8e7   :  { %v559_v4 = vmul.f32 %v557_v3, %v540_v1 }
 0x8e9   :  { %603 = vrot.lane.b32.xlu2 %v559_v4, %s1516_s3 }
 0x943   :  { %v604_v25 = vpop.permute.xlu2 %603 }
 0x953   :  { %v607_v6 = vpop.permute.xlu0 %606 }
 0x954   :  { %v609_v7 = vsel %vm212_vm5, %v604_v25, %v607_v6 }
 0x955   :  { %1318 = vmatmul.msk.f32.vlgmr.msrb.gmra.mxu2 %vm145_vm6, %v609_v7  ;;  %1319 = vmatmul.msk.f32.vlgmr.msrb.gmra.mxu3 %vm145_vm6, %v609_v7 }
 0x956   :  { %1037 = vmatpush.msrb.mxu2 %v1656_v43  ;;  %1149 = vmatpush.msrb.mxu3 %v1656_v43 }
 0x958   :  { %1038 = vmatpush.msrb.mxu2 %v1663_v44  ;;  %1150 = vmatpush.msrb.mxu3 %v1663_v44 }
 0x95a   :  { %1039 = vmatpush.msrb.mxu2 %v1668_v45  ;;  %1151 = vmatpush.msrb.mxu3 %v1668_v45 }
 0x95c   :  { %1040 = vmatpush.msrb.mxu2 %v1680_v47  ;;  %1152 = vmatpush.msrb.mxu3 %v1680_v47 }
 0x95e   :  { %1041 = vmatpush.msrb.mxu2 %v1692_v49  ;;  %1153 = vmatpush.msrb.mxu3 %v1692_v49 }
 0x960   :  { %1042 = vmatpush.msrb.mxu2 %v1701_v50  ;;  %1154 = vmatpush.msrb.mxu3 %v1701_v50 }
 0x962   :  { %1043 = vmatpush.msrb.mxu2 %v1710_v51  ;;  %1155 = vmatpush.msrb.mxu3 %v1710_v51 }
 0x964   :  { %1044 = vmatpush.msrb.mxu2 %v1733_v55  ;;  %1156 = vmatpush.msrb.mxu3 %v1733_v55 }
 0x9d8   :  { %v630_v43 = vpop.f32.mrf.mxu2  ;;  %v650_v44 = vpop.f32.mrf.mxu3 }
 0x9d9   :  { %v631_v45 = vadd.f32 %v630_v43, %v1641_v17  ;;  %v651_v47 = vadd.f32 %v650_v44, %v1780_v5 }
 0x9db   :  { %v654_v49 = vadd.f32 %v631_v45, %v1770_v59  ;;  %1413 = vtanh.f32 %v651_v47  ;;  %v1321_v51 = vmul.f32 -1.442695, %v651_v47 }
 0x9dd   :  { %1415 = vtanh.f32 %v654_v49  ;;  %v1320_v11 = vmul.f32 -1.442695, %v654_v49 }
 0x9de   :  { %1417 = vpow2.f32 %v1321_v51 }
 0x9e1   :  { %v1414_v9 = vpop.eup %1413 }
 0x9e2   :  { %714 = vrot.lane.b32.xlu2 %v1414_v9, %s1515_s27 }
 0x9e3   :  { %v1416_v50 = vpop.eup %1415 }
 0x9e4   :  { %677 = vrot.lane.b32.xlu1 %v1416_v50, %s1515_s27  ;;  %v1418_v14 = vpop.eup %1417 }
 0x9e5   :  { %v695_v55 = vadd.f32 1.0, %v1418_v14 }
 0x9e7   :  { %1419 = vrcp.f32 %v695_v55  ;;  %v707_v41 = vand.u32 2147483648, %v695_v55  ;;  %vm701_vm2 = vweird.f32 %v695_v55  ;;  %v705_v42 = vand.u32 2147483647, %v695_v55 }
 0x9e8   :  { %1421 = vpow2.f32 %v1320_v11 }
 0x9e9   :  { %v708_v15 = vor.u32 1.1754944e-38, %v707_v41  ;;  %vm706_vm4 = vcmp.eq.f32.partialorder %v705_v42, 8.507059e+37 }
 0x9ed   :  { %v1420_v10 = vpop.eup %1419 }
 0x9ee   :  { %v697_v36 = vmul.f32 %v1420_v10, %v695_v55  ;;  %v1422_v59 = vpop.eup %1421  ;;  %vm702_vm1 = vweird.f32 %v1420_v10 }
 0x9ef   :  { %v658_v39 = vadd.f32 1.0, %v1422_v59  ;;  %vm703_vm3 = vmor %vm701_vm2, %vm702_vm1 }
 0x9f0   :  { %v698_v12 = vsub.f32 1.0, %v697_v36 }
 0x9f1   :  { %1423 = vrcp.f32 %v658_v39  ;;  %v670_v1 = vand.u32 2147483648, %v658_v39  ;;  %vm664_vm8 = vweird.f32 %v658_v39  ;;  %v668_v2 = vand.u32 2147483647, %v658_v39 }
 0x9f2   :  { %v699_v37 = vmul.f32 %v1420_v10, %v698_v12 }
 0x9f3   :  { %v671_v18 = vor.u32 1.1754944e-38, %v670_v1  ;;  %vm669_vm10 = vcmp.eq.f32.partialorder %v668_v2, 8.507059e+37 }
 0x9f4   :  { %v700_v38 = vadd.f32 %v1420_v10, %v699_v37 }
 0x9f6   :  { %v704_v46 = vsel %vm703_vm3, %v1420_v10, %v700_v38 }
 0x9f7   :  { %v709_v52 = vsel %vm706_vm4, %v708_v15, %v704_v46  ;;  %v1424_v54 = vpop.eup %1423 }
 0x9f8   :  { %v660_v56 = vmul.f32 %v1424_v54, %v658_v39  ;;  %vm665_vm7 = vweird.f32 %v1424_v54  ;;  %v712_v22 = vmul.f32 %v709_v52, %v1869_v30 }
 0x9f9   :  { %vm666_vm9 = vmor %vm664_vm8, %vm665_vm7 }
 0x9fa   :  { %v661_v57 = vsub.f32 1.0, %v660_v56 }
 0x9fc   :  { %v662_v58 = vmul.f32 %v1424_v54, %v661_v57 }
 0x9fe   :  { %v663_v63 = vadd.f32 %v1424_v54, %v662_v58 }
 0xa00   :  { %v667_v8 = vsel %vm666_vm9, %v1424_v54, %v663_v63 }
 0xa01   :  { %v672_v20 = vsel %vm669_vm10, %v671_v18, %v667_v8 }
 0xa02   :  { %v675_v26 = vmul.f32 %v672_v20, %v1873_v34 }
 0xa3c   :  { %v715_v48 = vpop.permute.xlu2 %714 }
 0xa3d   :  { %v717_v53 = vmul.f32 %v715_v48, %v709_v52 }
 0xa3f   :  { %719 = vrot.lane.b32.xlu1 %v717_v53, %s1516_s3 }
 0xa56   :  { %v678_v19 = vpop.permute.xlu1 %677 }
 0xa57   :  { %v680_v40 = vmul.f32 %v678_v19, %v672_v20 }
 0xa59   :  { %682 = vrot.lane.b32.xlu0 %v680_v40, %s1516_s3 }
 0xab1   :  { %v720_v23 = vpop.permute.xlu1 %719 }
 0xab2   :  { %v1910_v16 = vadd.f32 %v720_v23, %v712_v22 }
 0xab4   :  { %1425 = vtanh.f32 %v1910_v16 }
 0xaba   :  { %v1426_v24 = vpop.eup %1425 }
 0xabb   :  { %725 = vrot.lane.b32.xlu0 %v1426_v24, %s1515_s27 }
 0xacb   :  { %v683_v27 = vpop.permute.xlu0 %682 }
 0xacc   :  { %v1915_v28 = vadd.f32 %v683_v27, %v675_v26 }
 0xace   :  { %1427 = vtanh.f32 %v1915_v28 }
 0xad4   :  { %v1428_v31 = vpop.eup %1427 }
 0xad5   :  { %688 = vrot.lane.b32.xlu2 %v1428_v31, %s1515_s27 }
 0xb2d   :  { %v726_v0 = vpop.permute.xlu0 %725 }
 0xb2e   :  { %v1919_v30 = vmul.f32 %v726_v0, %v709_v52 }
 0xb2f   :  { %v689_v32 = vpop.permute.xlu2 %688 }
 0xb30   :  { %v691_v13 = vmul.f32 %v689_v32, %v672_v20  ;;  %738 = vrot.lane.b32.xlu2 %v1919_v30, %s1515_s27 }
 0xb32   :  { %735 = vrot.lane.b32.xlu1 %v691_v13, %s1516_s3 }
 0xb8a   :  { %v739_v35 = vpop.permute.xlu2 %738 }
 0xba4   :  { %v736_v34 = vpop.permute.xlu1 %735 }
 0xba5   :  { %v741_v3 = vsel %vm212_vm5, %v736_v34, %v739_v35 }
 0xba6   :  { %1322 = vmatmul.msk.f32.vlgmr.msra.gmra.mxu1 %vm145_vm6, %v741_v3  ;;  %1323 = vmatmul.msk.f32.vlgmr.msra.gmra.mxu2 %vm145_vm6, %v741_v3 }
 0xc23   :  { %v762_v4 = vpop.f32.mrf.mxu1 }
 0xc24   :  { %v763_v25 = vadd.f32 %v762_v4, %v1641_v17 }
 0xc26   :  { %v786_v6 = vadd.f32 %v763_v25, %v1772_v60 }
 0xc28   :  { %1429 = vtanh.f32 %v786_v6  ;;  %v1324_v47 = vmul.f32 -1.442695, %v786_v6 }
 0xc29   :  { %v782_v7 = vpop.f32.mrf.mxu2 }
 0xc2a   :  { %v783_v43 = vadd.f32 %v782_v7, %v1780_v5 }
 0xc2c   :  { %1431 = vtanh.f32 %v783_v43  ;;  %v1325_v49 = vmul.f32 -1.442695, %v783_v43 }
 0xc2d   :  { %1433 = vpow2.f32 %v1324_v47 }
 0xc2e   :  { %v1430_v44 = vpop.eup %1429  ;;  %1435 = vpow2.f32 %v1325_v49 }
 0xc2f   :  { %809 = vrot.lane.b32.xlu0 %v1430_v44, %s1515_s27 }
 0xc32   :  { %v1432_v45 = vpop.eup %1431 }
 0xc33   :  { %846 = vrot.lane.b32.xlu1 %v1432_v45, %s1515_s27  ;;  %v1434_v9 = vpop.eup %1433 }
 0xc34   :  { %v790_v50 = vadd.f32 1.0, %v1434_v9  ;;  %v1436_v51 = vpop.eup %1435 }
 0xc35   :  { %v827_v60 = vadd.f32 1.0, %v1436_v51 }
 0xc36   :  { %1437 = vrcp.f32 %v790_v50  ;;  %v802_v39 = vand.u32 2147483648, %v790_v50  ;;  %vm796_vm12 = vweird.f32 %v790_v50  ;;  %v800_v41 = vand.u32 2147483647, %v790_v50 }
 0xc37   :  { %1439 = vrcp.f32 %v827_v60  ;;  %v839_v48 = vand.u32 2147483648, %v827_v60  ;;  %vm833_vm0 = vweird.f32 %v827_v60  ;;  %v837_v52 = vand.u32 2147483647, %v827_v60 }
 0xc38   :  { %v803_v15 = vor.u32 1.1754944e-38, %v802_v39  ;;  %vm801_vm15 = vcmp.eq.f32.partialorder %v800_v41, 8.507059e+37 }
 0xc39   :  { %v840_v58 = vor.u32 1.1754944e-38, %v839_v48  ;;  %vm838_vm2 = vcmp.eq.f32.partialorder %v837_v52, 8.507059e+37 }
 0xc3c   :  { %v1438_v14 = vpop.eup %1437 }
 0xc3d   :  { %v792_v55 = vmul.f32 %v1438_v14, %v790_v50  ;;  %v1440_v10 = vpop.eup %1439  ;;  %vm797_vm11 = vweird.f32 %v1438_v14 }
 0xc3e   :  { %v829_v36 = vmul.f32 %v1440_v10, %v827_v60  ;;  %vm798_vm13 = vmor %vm796_vm12, %vm797_vm11  ;;  %vm834_vm14 = vweird.f32 %v1440_v10 }
 0xc3f   :  { %v793_v11 = vsub.f32 1.0, %v792_v55  ;;  %vm835_vm1 = vmor %vm833_vm0, %vm834_vm14 }
 0xc40   :  { %v830_v37 = vsub.f32 1.0, %v829_v36 }
 0xc41   :  { %v794_v12 = vmul.f32 %v1438_v14, %v793_v11 }
 0xc42   :  { %v831_v38 = vmul.f32 %v1440_v10, %v830_v37 }
 0xc43   :  { %v795_v59 = vadd.f32 %v1438_v14, %v794_v12 }
 0xc44   :  { %v832_v46 = vadd.f32 %v1440_v10, %v831_v38 }
 0xc45   :  { %v799_v42 = vsel %vm798_vm13, %v1438_v14, %v795_v59 }
 0xc46   :  { %v804_v54 = vsel %vm801_vm15, %v803_v15, %v799_v42  ;;  %v836_v57 = vsel %vm835_vm1, %v1440_v10, %v832_v46 }
 0xc47   :  { %v841_v1 = vsel %vm838_vm2, %v840_v58, %v836_v57  ;;  %v807_v8 = vmul.f32 %v804_v54, %v1915_v28 }
 0xc48   :  { %v844_v40 = vmul.f32 %v841_v1, %v1910_v16 }
 0xca1   :  { %v810_v53 = vpop.permute.xlu0 %809 }
 0xca2   :  { %v812_v56 = vmul.f32 %v810_v53, %v804_v54 }
 0xca4   :  { %814 = vrot.lane.b32.xlu2 %v812_v56, %s1516_s3 }
 0xca5   :  { %v847_v63 = vpop.permute.xlu1 %846 }
 0xca6   :  { %v849_v2 = vmul.f32 %v847_v63, %v841_v1 }
 0xca8   :  { %851 = vrot.lane.b32.xlu0 %v849_v2, %s1516_s3 }
 0xcfe   :  { %v815_v18 = vpop.permute.xlu2 %814 }
 0xcff   :  { %v1935_v19 = vadd.f32 %v815_v18, %v807_v8 }
 0xd01   :  { %1441 = vtanh.f32 %v1935_v19 }
 0xd07   :  { %v1442_v20 = vpop.eup %1441 }
 0xd08   :  { %820 = vrot.lane.b32.xlu1 %v1442_v20, %s1515_s27 }
 0xd1a   :  { %v852_v22 = vpop.permute.xlu0 %851 }
 0xd1b   :  { %v1940_v23 = vadd.f32 %v852_v22, %v844_v40 }
 0xd1d   :  { %1443 = vtanh.f32 %v1940_v23 }
 0xd23   :  { %v1444_v24 = vpop.eup %1443 }
 0xd24   :  { %857 = vrot.lane.b32.xlu2 %v1444_v24, %s1515_s27 }
 0xd7a   :  { %v821_v26 = vpop.permute.xlu1 %820 }
 0xd7b   :  { %v823_v27 = vmul.f32 %v821_v26, %v804_v54 }
 0xd7d   :  { %867 = vrot.lane.b32.xlu0 %v823_v27, %s1516_s3 }
 0xd7e   :  { %v858_v28 = vpop.permute.xlu2 %857 }
 0xd7f   :  { %v1945_v31 = vmul.f32 %v858_v28, %v841_v1 }
 0xd81   :  { %870 = vrot.lane.b32.xlu1 %v1945_v31, %s1515_s27 }
 0xdef   :  { %v868_v0 = vpop.permute.xlu0 %867 }
 0xdf3   :  { %v871_v16 = vpop.permute.xlu1 %870 }
 0xdf4   :  { %v873_v32 = vsel %vm212_vm5, %v868_v0, %v871_v16 }
 0xdf5   :  { %1326 = vmatmul.msk.f32.vlgmr.msra.gmra.mxu3 %vm145_vm6, %v873_v32  ;;  %1327 = vmatmul.msk.f32.vlgmr.msrb.gmra.mxu0 %vm145_vm6, %v873_v32 }
 0xe72   :  { %v914_v13 = vpop.f32.mrf.mxu0 }
 0xe73   :  { %v915_v35 = vadd.f32 %v914_v13, %v1780_v5 }
 0xe75   :  { %1445 = vtanh.f32 %v915_v35  ;;  %v1329_v45 = vmul.f32 -1.442695, %v915_v35 }
 0xe78   :  { %v894_v34 = vpop.f32.mrf.mxu3 }
 0xe79   :  { %v895_v3 = vadd.f32 %v894_v34, %v1641_v17 }
 0xe7b   :  { %v1446_v4 = vpop.eup %1445  ;;  %v918_v25 = vadd.f32 %v895_v3, %v1774_v61 }
 0xe7c   :  { %978 = vrot.lane.b32.xlu0 %v1446_v4, %s1515_s27 }
 0xe7d   :  { %1447 = vtanh.f32 %v918_v25  ;;  %v1328_v7 = vmul.f32 -1.442695, %v918_v25 }
 0xe7f   :  { %1449 = vpow2.f32 %v1328_v7 }
 0xe83   :  { %v1448_v6 = vpop.eup %1447 }
 0xe84   :  { %941 = vrot.lane.b32.xlu2 %v1448_v6, %s1515_s27 }
 0xe85   :  { %v1450_v43 = vpop.eup %1449 }
 0xe86   :  { %v922_v44 = vadd.f32 1.0, %v1450_v43 }
 0xe88   :  { %1451 = vrcp.f32 %v922_v44  ;;  %v934_v55 = vand.u32 2147483648, %v922_v44  ;;  %vm928_vm4 = vweird.f32 %v922_v44  ;;  %v932_v10 = vand.u32 2147483647, %v922_v44 }
 0xe89   :  { %1453 = vpow2.f32 %v1329_v45 }
 0xe8a   :  { %v935_v12 = vor.u32 1.1754944e-38, %v934_v55  ;;  %vm933_vm8 = vcmp.eq.f32.partialorder %v932_v10, 8.507059e+37 }
 0xe8e   :  { %v1452_v47 = vpop.eup %1451 }
 0xe8f   :  { %v1454_v49 = vpop.eup %1453  ;;  %v924_v9 = vmul.f32 %v1452_v47, %v922_v44  ;;  %vm929_vm3 = vweird.f32 %v1452_v47 }
 0xe90   :  { %v959_v50 = vadd.f32 1.0, %v1454_v49  ;;  %vm930_vm7 = vmor %vm928_vm4, %vm929_vm3 }
 0xe91   :  { %v925_v51 = vsub.f32 1.0, %v924_v9 }
 0xe92   :  { %1455 = vrcp.f32 %v959_v50  ;;  %v971_v46 = vand.u32 2147483648, %v959_v50  ;;  %vm965_vm10 = vweird.f32 %v959_v50  ;;  %v969_v15 = vand.u32 2147483647, %v959_v50 }
 0xe93   :  { %v926_v61 = vmul.f32 %v1452_v47, %v925_v51 }
 0xe94   :  { %v972_v52 = vor.u32 1.1754944e-38, %v971_v46  ;;  %vm970_vm12 = vcmp.eq.f32.partialorder %v969_v15, 8.507059e+37 }
 0xe95   :  { %v927_v60 = vadd.f32 %v1452_v47, %v926_v61 }
 0xe97   :  { %v931_v11 = vsel %vm930_vm7, %v1452_v47, %v927_v60 }
 0xe98   :  { %v1456_v14 = vpop.eup %1455  ;;  %v936_v59 = vsel %vm933_vm8, %v935_v12, %v931_v11 }
 0xe99   :  { %v961_v36 = vmul.f32 %v1456_v14, %v959_v50  ;;  %vm966_vm9 = vweird.f32 %v1456_v14  ;;  %v939_v1 = vmul.f32 %v936_v59, %v1935_v19 }
 0xe9a   :  { %vm967_vm11 = vmor %vm965_vm10, %vm966_vm9 }
 0xe9b   :  { %v962_v39 = vsub.f32 1.0, %v961_v36 }
 0xe9d   :  { %v963_v41 = vmul.f32 %v1456_v14, %v962_v39 }
 0xe9f   :  { %v964_v42 = vadd.f32 %v1456_v14, %v963_v41 }
 0xea1   :  { %v968_v48 = vsel %vm967_vm11, %v1456_v14, %v964_v42 }
 0xea2   :  { %v973_v54 = vsel %vm970_vm12, %v972_v52, %v968_v48 }
 0xea3   :  { %v976_v57 = vmul.f32 %v973_v54, %v1940_v23 }
 0xede   :  { %v942_v37 = vpop.permute.xlu2 %941 }
 0xedf   :  { %v944_v38 = vmul.f32 %v942_v37, %v936_v59 }
 0xee1   :  { %946 = vrot.lane.b32.xlu1 %v944_v38, %s1516_s3 }
 0xeee   :  { %v979_v53 = vpop.permute.xlu0 %978 }
 0xeef   :  { %v981_v56 = vmul.f32 %v979_v53, %v973_v54 }
 0xef1   :  { %983 = vrot.lane.b32.xlu2 %v981_v56, %s1516_s3 }
 0xf4b   :  { %v984_v58 = vpop.permute.xlu2 %983 }
 0xf4c   :  { %v1960_v63 = vadd.f32 %v984_v58, %v976_v57 }
 0xf4e   :  { %1457 = vtanh.f32 %v1960_v63 }
 0xf53   :  { %v947_v2 = vpop.permute.xlu1 %946 }
 0xf54   :  { %v1458_v8 = vpop.eup %1457  ;;  %v1964_v18 = vadd.f32 %v947_v2, %v939_v1 }
 0xf55   :  { %989 = vrot.lane.b32.xlu1 %v1458_v8, %s1515_s27 }
 0xf56   :  { %1459 = vtanh.f32 %v1964_v18 }
 0xf5c   :  { %v1460_v20 = vpop.eup %1459 }
 0xf5d   :  { %952 = vrot.lane.b32.xlu0 %v1460_v20, %s1515_s27  ;;  %v1213_v20 = vld [vmem:[%s2083_s4 + $0x10] sm:$0xff] }
 0xfc7   :  { %v990_v40 = vpop.permute.xlu1 %989 }
 0xfc8   :  { %v1969_v22 = vmul.f32 %v990_v40, %v973_v54  ;;  %v1212_v40 = vld [vmem:[%s2083_s4 + $0x8] sm:$0xff] }
 0xfca   :  { %1002 = vrot.lane.b32.xlu0 %v1969_v22, %s1515_s27 }
 0xfcf   :  { %v953_v23 = vpop.permute.xlu0 %952 }
 0xfd0   :  { %v955_v24 = vmul.f32 %v953_v23, %v936_v59 }
 0xfd2   :  { %999 = vrot.lane.b32.xlu2 %v955_v24, %s1516_s3 }
0x102c   :  { %v1000_v19 = vpop.permute.xlu2 %999 }
0x103c   :  { %v1003_v26 = vpop.permute.xlu0 %1002 }
0x103d   :  { %v1005_v27 = vsel %vm212_vm5, %v1000_v19, %v1003_v26 }
0x103e   :  { %1330 = vmatmul.msk.f32.vlgmr.msrb.gmra.mxu1 %vm145_vm6, %v1005_v27  ;;  %1331 = vmatmul.msk.f32.vlgmr.msrb.gmra.mxu2 %vm145_vm6, %v1005_v27 }
0x10bb   :  { %v1026_v28 = vpop.f32.mrf.mxu1 }
0x10bc   :  { %v1027_v0 = vadd.f32 %v1026_v28, %v1641_v17  ;;  %v2020_v28 = vld [vmem:[%s2084_s5] ss:$0 sm:$0xff] }
0x10be   :  { %v1050_v16 = vadd.f32 %v1027_v0, %v1776_v62 }
0x10c0   :  { %1461 = vtanh.f32 %v1050_v16  ;;  %v1332_v6 = vmul.f32 -1.442695, %v1050_v16 }
0x10c1   :  { %v1046_v32 = vpop.f32.mrf.mxu2 }
0x10c2   :  { %v1047_v13 = vadd.f32 %v1046_v32, %v1780_v5 }
0x10c4   :  { %1463 = vtanh.f32 %v1047_v13  ;;  %v1333_v3 = vmul.f32 -1.442695, %v1047_v13 }
0x10c6   :  { %v1462_v35 = vpop.eup %1461  ;;  %1465 = vpow2.f32 %v1333_v3 }
0x10c7   :  { %1073 = vrot.lane.b32.xlu1 %v1462_v35, %s1515_s27 }
0x10ca   :  { %v1464_v34 = vpop.eup %1463 }
0x10cb   :  { %1110 = vrot.lane.b32.xlu2 %v1464_v34, %s1515_s27 }
0x10cc   :  { %v1466_v4 = vpop.eup %1465 }
0x10cd   :  { %v1091_v25 = vadd.f32 1.0, %v1466_v4 }
0x10cf   :  { %1467 = vrcp.f32 %v1091_v25  ;;  %v1103_v49 = vand.u32 2147483648, %v1091_v25  ;;  %vm1097_vm14 = vweird.f32 %v1091_v25  ;;  %v1101_v9 = vand.u32 2147483647, %v1091_v25 }
0x10d0   :  { %1469 = vpow2.f32 %v1332_v6 }
0x10d1   :  { %v1104_v61 = vor.u32 1.1754944e-38, %v1103_v49  ;;  %vm1102_vm0 = vcmp.eq.f32.partialorder %v1101_v9, 8.507059e+37 }
0x10d5   :  { %v1468_v17 = vpop.eup %1467 }
0x10d6   :  { %v1093_v62 = vmul.f32 %v1468_v17, %v1091_v25  ;;  %v1470_v7 = vpop.eup %1469  ;;  %vm1098_vm13 = vweird.f32 %v1468_v17 }
0x10d7   :  { %v1054_v44 = vadd.f32 1.0, %v1470_v7  ;;  %vm1099_vm15 = vmor %vm1097_vm14, %vm1098_vm13 }
0x10d8   :  { %v1094_v43 = vsub.f32 1.0, %v1093_v62 }
0x10d9   :  { %1471 = vrcp.f32 %v1054_v44  ;;  %v1066_v37 = vand.u32 2147483648, %v1054_v44  ;;  %vm1060_vm2 = vweird.f32 %v1054_v44  ;;  %v1064_v59 = vand.u32 2147483647, %v1054_v44 }
0x10da   :  { %v1095_v45 = vmul.f32 %v1468_v17, %v1094_v43 }
0x10db   :  { %v1067_v39 = vor.u32 1.1754944e-38, %v1066_v37  ;;  %vm1065_vm4 = vcmp.eq.f32.partialorder %v1064_v59, 8.507059e+37 }
0x10dc   :  { %v1096_v47 = vadd.f32 %v1468_v17, %v1095_v45 }
0x10de   :  { %v1100_v50 = vsel %vm1099_vm15, %v1468_v17, %v1096_v47 }
0x10df   :  { %v1472_v51 = vpop.eup %1471  ;;  %v1105_v14 = vsel %vm1102_vm0, %v1104_v61, %v1100_v50 }
0x10e0   :  { %v1056_v10 = vmul.f32 %v1472_v51, %v1054_v44  ;;  %vm1061_vm1 = vweird.f32 %v1472_v51  ;;  %v1108_v15 = vmul.f32 %v1105_v14, %v1960_v63 }
0x10e1   :  { %vm1062_vm3 = vmor %vm1060_vm2, %vm1061_vm1 }
0x10e2   :  { %v1057_v11 = vsub.f32 1.0, %v1056_v10 }
0x10e4   :  { %v1058_v36 = vmul.f32 %v1472_v51, %v1057_v11 }
0x10e6   :  { %v1059_v12 = vadd.f32 %v1472_v51, %v1058_v36 }
0x10e8   :  { %v1063_v38 = vsel %vm1062_vm3, %v1472_v51, %v1059_v12 }
0x10e9   :  { %v1068_v42 = vsel %vm1065_vm4, %v1067_v39, %v1063_v38 }
0x10ea   :  { %v1071_v54 = vmul.f32 %v1068_v42, %v1964_v18  ;;  %v1214_v18 = vld [vmem:[%s2083_s4 + $0x18] sm:$0xff] }
0x10eb   :  { %1255 = vmatpush.msra.mxu0 %v1214_v18 }
0x10ed   :  { %1256 = vmatpush.msra.mxu0 %v1213_v20 }
0x10ef   :  { %1257 = vmatpush.msra.mxu0 %v1212_v40 }
0x1125   :  { %v1111_v60 = vpop.permute.xlu2 %1110 }
0x1126   :  { %v1113_v55 = vmul.f32 %v1111_v60, %v1105_v14 }
0x1128   :  { %1115 = vrot.lane.b32.xlu1 %v1113_v55, %s1516_s3 }
0x1139   :  { %v1074_v41 = vpop.permute.xlu1 %1073 }
0x113a   :  { %v1076_v46 = vmul.f32 %v1074_v41, %v1068_v42 }
0x113c   :  { %1078 = vrot.lane.b32.xlu0 %v1076_v46, %s1516_s3 }
0x119a   :  { %v1116_v48 = vpop.permute.xlu1 %1115 }
0x119b   :  { %v1985_v52 = vadd.f32 %v1116_v48, %v1108_v15 }
0x119d   :  { %1473 = vtanh.f32 %v1985_v52 }
0x11a3   :  { %v1474_v53 = vpop.eup %1473 }
0x11a4   :  { %1121 = vrot.lane.b32.xlu0 %v1474_v53, %s1515_s27 }
0x11ae   :  { %v1079_v56 = vpop.permute.xlu0 %1078 }
0x11af   :  { %v1081_v57 = vadd.f32 %v1079_v56, %v1071_v54 }
0x11b1   :  { %1475 = vtanh.f32 %v1081_v57 }
0x11b7   :  { %v1476_v58 = vpop.eup %1475 }
0x11b8   :  { %1084 = vrot.lane.b32.xlu2 %v1476_v58, %s1515_s27 }
0x1212   :  { %v1085_v1 = vpop.permute.xlu2 %1084 }
0x1213   :  { %v1087_v2 = vmul.f32 %v1085_v1, %v1068_v42 }
0x1215   :  { %1131 = vrot.lane.b32.xlu1 %v1087_v2, %s1516_s3 }
0x1216   :  { %v1122_v63 = vpop.permute.xlu0 %1121 }
0x1217   :  { %v1124_v8 = vmul.f32 %v1122_v63, %v1105_v14 }
0x1219   :  { %1134 = vrot.lane.b32.xlu2 %v1124_v8, %s1515_s27 }
0x1221   :  { %334 = vrot.lane.b32.xlu2 %v1797_v21, %s1516_s3  ;;  %v1211_v21 = vld [vmem:[%s2083_s4] sm:$0xff] }
0x1222   :  { %1258 = vmatpush.msra.mxu0 %v1211_v21 }
0x1229   :  { %598 = vrot.lane.b32.xlu2 %v1878_v29, %s1516_s3 }
0x1231   :  { %994 = vrot.lane.b32.xlu2 %v1969_v22, %s1516_s3 }
0x1273   :  { %v1135_v29 = vpop.permute.xlu2 %1134 }
0x127b   :  { %v335_v22 = vpop.permute.xlu2 %334 }
0x127c   :  { %337 = vst.msk [vmem:[#allocation3] sm:$0xff] %vm212_vm5, %v335_v22 }
0x1283   :  { %v599_v23 = vpop.permute.xlu2 %598  ;;  %v1203_v24 = vld [vmem:[#allocation3] sm:$0xff] }
0x1284   :  { %601 = vst.msk [vmem:[#allocation3 + $0x10] sm:$0xff] %vm212_vm5, %v599_v23  ;;  %1336 = vmatmul.msk.f32.vlgmr.msra.gmra.mxu0 %vm212_vm5, %v1203_v24 }
0x1287   :  { %v1132_v19 = vpop.permute.xlu1 %1131 }
0x1288   :  { %v1137_v26 = vsel %vm212_vm5, %v1132_v19, %v1135_v29 }
0x1289   :  { %1334 = vmatmul.msk.f32.vlgmr.msrb.gmra.mxu3 %vm145_vm6, %v1137_v26 }
0x128b   :  { %v995_v27 = vpop.permute.xlu2 %994  ;;  %v1205_v61 = vld [vmem:[#allocation3 + $0x10] sm:$0xff] }
0x128c   :  { %997 = vst.msk [vmem:[#allocation3 + $0x28] sm:$0xff] %vm212_vm5, %v995_v27 }
0x1293   :  { %v1208_v15 = vld [vmem:[#allocation3 + $0x28] sm:$0xff] }
0x1301   :  { %v1260_v0 = vpop.f32.mrf.mxu0 }
0x1302   :  { %v1261_v16 = vadd.f32 %v2020_v28, %v1260_v0 }
0x1304   :  { %1284 = vst [vmem:[%s2085_s6] sm:$0xff] %v1261_v16 }
0x130c   :  { %v1158_v32 = vpop.f32.mrf.mxu3 }
0x130d   :  { %v1159_v13 = vadd.f32 %v1158_v32, %v1780_v5 }
0x130f   :  { %1477 = vtanh.f32 %v1159_v13  ;;  %v1335_v34 = vmul.f32 -1.442695, %v1159_v13 }
0x1311   :  { %1479 = vpow2.f32 %v1335_v34 }
0x1315   :  { %v1478_v35 = vpop.eup %1477 }
0x1316   :  { %1183 = vrot.lane.b32.xlu0 %v1478_v35, %s1515_s27 }
0x1317   :  { %v1480_v3 = vpop.eup %1479 }
0x1318   :  { %v1164_v4 = vadd.f32 1.0, %v1480_v3 }
0x131a   :  { %1481 = vrcp.f32 %v1164_v4  ;;  %v1176_v7 = vand.u32 2147483648, %v1164_v4  ;;  %vm1170_vm7 = vweird.f32 %v1164_v4  ;;  %v1174_v43 = vand.u32 2147483647, %v1164_v4 }
0x131c   :  { %v1177_v44 = vor.u32 1.1754944e-38, %v1176_v7  ;;  %vm1175_vm9 = vcmp.eq.f32.partialorder %v1174_v43, 8.507059e+37 }
0x131e   :  { %466 = vrot.lane.b32.xlu0 %v1838_v33, %s1516_s3 }
0x1320   :  { %v1482_v25 = vpop.eup %1481 }
0x1321   :  { %v1166_v6 = vmul.f32 %v1482_v25, %v1164_v4  ;;  %vm1171_vm6 = vweird.f32 %v1482_v25 }
0x1322   :  { %vm1172_vm8 = vmor %vm1170_vm7, %vm1171_vm6 }
0x1323   :  { %v1167_v5 = vsub.f32 1.0, %v1166_v6 }
0x1325   :  { %v1168_v17 = vmul.f32 %v1482_v25, %v1167_v5 }
0x1326   :  { %730 = vrot.lane.b32.xlu0 %v1919_v30, %s1516_s3 }
0x1327   :  { %v1169_v62 = vadd.f32 %v1482_v25, %v1168_v17 }
0x1329   :  { %v1173_v33 = vsel %vm1172_vm8, %v1482_v25, %v1169_v62 }
0x132a   :  { %v1178_v45 = vsel %vm1175_vm9, %v1177_v44, %v1173_v33 }
0x132b   :  { %v1181_v14 = vmul.f32 %v1178_v45, %v1985_v52 }
0x132e   :  { %1126 = vrot.lane.b32.xlu0 %v1124_v8, %s1516_s3 }
0x1388   :  { %v1184_v30 = vpop.permute.xlu0 %1183 }
0x1389   :  { %v1186_v47 = vmul.f32 %v1184_v30, %v1178_v45 }
0x138b   :  { %1188 = vrot.lane.b32.xlu1 %v1186_v47, %s1516_s3 }
0x1390   :  { %v467_v49 = vpop.permute.xlu0 %466 }
0x1391   :  { %469 = vst.msk [vmem:[#allocation3 + $0x8] sm:$0xff] %vm212_vm5, %v467_v49 }
0x1398   :  { %v731_v9 = vpop.permute.xlu0 %730  ;;  %v1204_v50 = vld [vmem:[#allocation3 + $0x8] sm:$0xff] }
0x1399   :  { %733 = vst.msk [vmem:[#allocation3 + $0x18] sm:$0xff] %vm212_vm5, %v731_v9  ;;  %1337 = vmatmul.msk.f32.gmra.mxu0 %vm212_vm5, %v1204_v50 }
0x13a0   :  { %v1127_v51 = vpop.permute.xlu0 %1126  ;;  %v1206_v60 = vld [vmem:[#allocation3 + $0x18] sm:$0xff] }
0x13a1   :  { %1129 = vst.msk [vmem:[#allocation3 + $0x30] sm:$0xff] %vm212_vm5, %v1127_v51  ;;  %1338 = vmatmul.msk.f32.gmra.mxu0 %vm212_vm5, %v1205_v61 }
0x13a8   :  { %v1209_v48 = vld [vmem:[#allocation3 + $0x30] sm:$0xff] }
0x13a9   :  { %1339 = vmatmul.msk.f32.gmra.mxu0 %vm212_vm5, %v1206_v60 }
0x13fd   :  { %v1189_v55 = vpop.permute.xlu1 %1188 }
0x13fe   :  { %v1191_v10 = vadd.f32 %v1189_v55, %v1181_v14 }
0x1400   :  { %1483 = vtanh.f32 %v1191_v10 }
0x1406   :  { %v1484_v11 = vpop.eup %1483 }
0x1407   :  { %1194 = vrot.lane.b32.xlu1 %v1484_v11, %s1515_s27 }
0x140f   :  { %862 = vrot.lane.b32.xlu1 %v1945_v31, %s1516_s3 }
0x1416   :  { %v1263_v36 = vpop.f32.mrf.mxu0 }
0x1417   :  { %v1264_v12 = vadd.f32 %v2020_v28, %v1263_v36 }
0x1419   :  { %1285 = vst [vmem:[%s2085_s6 + $0x8] sm:$0xff] %v1264_v12 }
0x141e   :  { %v1266_v37 = vpop.f32.mrf.mxu0 }
0x141f   :  { %v1267_v59 = vadd.f32 %v2020_v28, %v1266_v37 }
0x1421   :  { %1286 = vst [vmem:[%s2085_s6 + $0x10] sm:$0xff] %v1267_v59 }
0x1426   :  { %v1269_v38 = vpop.f32.mrf.mxu0 }
0x1427   :  { %v1270_v39 = vadd.f32 %v2020_v28, %v1269_v38 }
0x1429   :  { %1287 = vst [vmem:[%s2085_s6 + $0x18] sm:$0xff] %v1270_v39 }
0x1479   :  { %v1195_v31 = vpop.permute.xlu1 %1194 }
0x147a   :  { %v1197_v41 = vmul.f32 %v1195_v31, %v1178_v45 }
0x147c   :  { %1199 = vrot.lane.b32.xlu1 %v1197_v41, %s1516_s3 }
0x1481   :  { %v863_v42 = vpop.permute.xlu1 %862 }
0x1482   :  { %865 = vst.msk [vmem:[#allocation3 + $0x20] sm:$0xff] %vm212_vm5, %v863_v42 }
0x1489   :  { %v1207_v46 = vld [vmem:[#allocation3 + $0x20] sm:$0xff] }
0x148a   :  { %1340 = vmatmul.msk.f32.gmra.mxu0 %vm212_vm5, %v1207_v46 }
0x1492   :  { %1341 = vmatmul.msk.f32.gmra.mxu0 %vm212_vm5, %v1208_v15 }
0x149a   :  { %1342 = vmatmul.msk.f32.gmra.mxu0 %vm212_vm5, %v1209_v48 }
0x14ee   :  { %v1200_v52 = vpop.permute.xlu1 %1199 }
0x14ef   :  { %1202 = vst.msk [vmem:[#allocation3 + $0x38] sm:$0xff] %vm212_vm5, %v1200_v52 }
0x14f6   :  { %v1210_v53 = vld [vmem:[#allocation3 + $0x38] sm:$0xff] }
0x14f7   :  { %1343 = vmatmul.msk.f32.gmra.mxu0 %vm212_vm5, %v1210_v53 }
0x1507   :  { %v1272_v54 = vpop.f32.mrf.mxu0 }
0x1508   :  { %v1273_v56 = vadd.f32 %v2020_v28, %v1272_v54 }
0x150a   :  { %1288 = vst [vmem:[%s2085_s6 + $0x20] sm:$0xff] %v1273_v56 }
0x150f   :  { %v1275_v57 = vpop.f32.mrf.mxu0 }
0x1510   :  { %v1276_v58 = vadd.f32 %v2020_v28, %v1275_v57 }
0x1512   :  { %1289 = vst [vmem:[%s2085_s6 + $0x28] sm:$0xff] %v1276_v58 }
0x1517   :  { %v1278_v1 = vpop.f32.mrf.mxu0 }
0x1518   :  { %v1279_v2 = vadd.f32 %v2020_v28, %v1278_v1 }
0x151a   :  { %1290 = vst [vmem:[%s2085_s6 + $0x30] sm:$0xff] %v1279_v2 }
0x1574   :  { %v1281_v63 = vpop.f32.mrf.mxu0 }
0x1575   :  { %v1282_v8 = vadd.f32 %v2020_v28, %v1281_v63 }
0x1577   :  { %1291 = vst [vmem:[%s2085_s6 + $0x38] sm:$0xff] %v1282_v8 }
0x1578   :  { %1296 = vsyncpa [#allocation5], 1 }

</bundles_post_ra>
